<compile_context>
chip_gen: v7x
topology: tpu7x:2x2x1
jax: 0.10.0
libtpu: 0.0.40
codegen_flags: <defaults>
</compile_context>

<pallas_src>
import numpy as np
import jax
import jax.numpy as jnp
from jax import lax
from jax.experimental import pallas as pl
from jax.experimental.pallas import tpu as pltpu


# ----------------------------------------------------------------------------
# Host-side helpers: bilinear deconv + crop folded into a dense matrix.
# ----------------------------------------------------------------------------
def _make_bilinear_1d(stride: int) -> np.ndarray:
    # matches make_bilinear_weights(size=2*stride, 1): separable 1-D factor
    k = 2 * stride
    center = stride - 0.5
    return (1.0 - np.abs(np.arange(k) - center) / stride).astype(np.float32)


def bilinear_upsample_matrix(h_in: int, stride: int, h_out: int) -> np.ndarray:
    """A with A[o, i] = filt[o - stride*i], rows cropped like torch `crop(...)`."""
    k = 2 * stride
    f = _make_bilinear_1d(stride)
    h_full = (h_in - 1) * stride + k
    a = np.zeros((h_full, h_in), dtype=np.float32)
    for i in range(h_in):
        a[i * stride:i * stride + k, i] = f
    # TODO(synk): Python round() banker's-rounds .5 ties; identical to torch crop()
    # whenever (h_full - h_out) is even (true when H, W are stride multiples).
    y1 = int(round((h_full - h_out) / 2.0))
    return a[y1:y1 + h_out, :]


def _vmem_budget_bytes() -> int:
    cap = 64 * 1024 * 1024          # conservative default = v7x physical VMEM / core
    try:
        info = pltpu.get_tpu_info()
        cap = int(getattr(info, "vmem_capacity_bytes", cap))
    except Exception:
        pass
    return (cap * 3) // 4            # ~48 MiB on v7x, ~96 MiB on v5e/v6e


def _pick_row_tile(img_h, img_w, c1, f1_bytes, hks, budget, requested=None):
    """Largest row tile whose pipelined VMEM footprint fits the per-generation budget."""
    if requested is not None:
        if img_h % requested != 0 or not (requested % 16 == 0 or requested == img_h):
            raise ValueError("row_tile must divide H and be a multiple of 16 "
                             "(bf16 f1 sublane packing) or equal H")
        return requested

    def footprint(th):
        return (2 * c1 * th * img_w * f1_bytes           # f1 tile, double-buffered (bf16)
                + 2 * 6 * th * img_w * 4                 # six f32 output tiles, double-buffered
                + 2 * sum(th * hk * 4 for hk in hks)     # Ah row tiles, double-buffered
                + sum(hk * img_w * 4 for hk in hks)      # t_k maps, single-buffered
                + (4 << 20))                             # headroom for compiler scratch

    candidates = [t for t in (512, 256, 128, 64, 32, 16) if t <= img_h and img_h % t == 0]
    for th in candidates:
        if footprint(th) <= budget:
            return th
    return candidates[-1] if candidates else img_h


# ----------------------------------------------------------------------------
# Pallas kernel: the full-resolution part of the HED head, grid = (batch, row tiles).
# ----------------------------------------------------------------------------
def _score_dsn1(f1_ref, w_ref):
    """1x1 conv C1->1 on the (C1, TH, W) f1 block.

    Pure VPU scalar-weighted plane accumulation with W kept in lanes (no XLU
    reduce, no relayout).  Four independent partial sums keep the 4 VALU slots
    filled; a fori_loop bounds code size / live ranges for large C1 (VGG16: 64).
    Loads are bf16, accumulation is f32 (works on v5e which has no bf16 VPU).
    """
    c_total, th, w = f1_ref.shape

    def term(c):
        return f1_ref[c].astype(jnp.float32) * w_ref[c]

    if c_total >= 8 and c_total % 4 == 0:
        def body(i, accs):
            a0, a1, a2, a3 = accs
            base = i * 4
            return (a0 + term(base), a1 + term(base + 1),
                    a2 + term(base + 2), a3 + term(base + 3))
        z = jnp.zeros((th, w), jnp.float32)
        a0, a1, a2, a3 = lax.fori_loop(0, c_total // 4, body, (z, z, z, z), unroll=2)
        return (a0 + a1) + (a2 + a3)

    nparts = min(4, c_total)
    parts = [term(c) for c in range(nparts)]
    for c in range(nparts, c_total):
        parts[c % nparts] = parts[c % nparts] + term(c)
    acc = parts[0]
    for p in parts[1:]:
        acc = acc + p
    return acc


def _hed_head_kernel(f1_ref,                                   # (C1, TH, W) bf16
                     t2_ref, t3_ref, t4_ref, t5_ref,           # (Hk, W) f32, per-batch constants
                     ah2_ref, ah3_ref, ah4_ref, ah5_ref,       # (TH, Hk) f32, row-blocked
                     w1_ref, b_ref, fw_ref,                    # SMEM scalars
                     o1_ref, o2_ref, o3_ref, o4_ref, o5_ref, ofuse_ref):  # (TH, W) f32
    s1 = _score_dsn1(f1_ref, w1_ref) + b_ref[0]
    o1_ref[...] = jax.nn.sigmoid(s1)
    fuse = fw_ref[0] * s1 + b_ref[1]

    # One lane-dense MXU matmul per side output; sigmoid + fuse interleaved so at
    # most ~2 (TH, W) tiles stay live.
    for idx, (ah_ref, t_ref, o_ref) in enumerate(
            ((ah2_ref, t2_ref, o2_ref), (ah3_ref, t3_ref, o3_ref),
             (ah4_ref, t4_ref, o4_ref), (ah5_ref, t5_ref, o5_ref))):
        u = jnp.dot(ah_ref[...], t_ref[...], preferred_element_type=jnp.float32)
        o_ref[...] = jax.nn.sigmoid(u)
        fuse = fuse + fw_ref[idx + 1] * u

    ofuse_ref[...] = jax.nn.sigmoid(fuse)


def hed_head(features, score_ws, biases, fuse_w, img_h, img_w, row_tile=None):
    """features: 5 NCHW arrays (N, Ck, Hk, Wk) at scales 1, 1/2, 1/4, 1/8, 1/16.

    Returns the 6 HED outputs (so1..so5, fuse), sigmoid'ed, each NCHW (N, 1, H, W),
    matching the PyTorch module's returned list.
    """
    n, c1 = features[0].shape[0], features[0].shape[1]
    strides = (2, 4, 8, 16)
    hi = jax.lax.Precision.HIGHEST

    # --- tiny XLA pre-pass: side scores 2..5 + W-axis upsample, pre-contracted ---
    #   t_k = (w_k . f_k + b_k) @ AwT_k  : (N, Hk, W)  (a few hundred KB total)
    ah_mats, t_maps, hks = [], [], []
    for k, (f, s) in enumerate(zip(features[1:], strides), start=1):
        hk, wk = f.shape[2], f.shape[3]
        hks.append(hk)
        ah_mats.append(jnp.asarray(bilinear_upsample_matrix(hk, s, img_h)))      # (H, Hk)
        awt = jnp.asarray(bilinear_upsample_matrix(wk, s, img_w).T)               # (Wk, W)
        so = jnp.einsum("nchw,c->nhw", f, score_ws[k], precision=hi) + biases[k]  # (N, Hk, Wk)
        t_maps.append(jnp.einsum("nhk,kw->nhw", so, awt, precision=hi))           # (N, Hk, W)

    # --- stream the dominant full-resolution feature in bf16 (HBM-bound read) ---
    f1 = features[0].astype(jnp.bfloat16)

    budget = _vmem_budget_bytes()
    th = _pick_row_tile(img_h, img_w, c1, f1.dtype.itemsize, hks, budget, row_tile)
    n_row_tiles = img_h // th

    f1_spec = pl.BlockSpec((None, c1, th, img_w), lambda b, j: (b, 0, j, 0))
    t_specs = [pl.BlockSpec((None, hk, img_w), lambda b, j: (b, 0, 0),
                            pipeline_mode=pl.Buffered(1))        # constant across row tiles
               for hk in hks]
    ah_specs = [pl.BlockSpec((th, hk), lambda b, j: (j, 0)) for hk in hks]
    smem_spec = pl.BlockSpec(memory_space=pltpu.MemorySpace.SMEM)

    out_block = pl.BlockSpec((None, None, th, img_w), lambda b, j: (b, 0, j, 0))
    out_shape = tuple(jax.ShapeDtypeStruct((n, 1, img_h, img_w), jnp.float32)
                      for _ in range(6))

    grid_spec = pltpu.PrefetchScalarGridSpec(
        num_scalar_prefetch=0,
        grid=(n, n_row_tiles),
        in_specs=[f1_spec] + t_specs + ah_specs + [smem_spec] * 3,
        out_specs=[out_block] * 6,
    )

    kernel_biases = jnp.stack([biases[0], biases[5]])   # dsn1 bias, fuse bias

    outs = pl.pallas_call(
        _hed_head_kernel,
        out_shape=out_shape,
        grid_spec=grid_spec,
        compiler_params=pltpu.CompilerParams(
            # No state is carried across either grid axis any more -> both parallel
            # (lets v7x's 2 TensorCores split the row-tile axis even at batch 1;
            # a no-op on single-TC v5e/v6e).
            dimension_semantics=("parallel", "parallel"),
            vmem_limit_bytes=int(budget),
        ),
    )(f1, *t_maps, *ah_mats, score_ws[0], kernel_biases, fuse_w)

    return list(outs)


# ----------------------------------------------------------------------------
# Backbone stand-in (plain JAX, NHWC internally).
# TODO(synk): the real module uses create_body(vgg16/resnet, pretrained=True);
# replaced by a small deterministic conv stack with the same 5-scale hook layout.
# ----------------------------------------------------------------------------
def backbone_features(x_nhwc, params):
    feats = []
    h = x_nhwc
    for i, (w, b) in enumerate(params):
        h = jax.lax.conv_general_dilated(
            h, w, window_strides=(1, 1), padding="SAME",
            dimension_numbers=("NHWC", "HWIO", "NHWC"))
        h = jax.nn.relu(h + b)
        feats.append(h)
        if i < len(params) - 1:
            h = jax.lax.reduce_window(h, -jnp.inf, jax.lax.max,
                                      (1, 2, 2, 1), (1, 2, 2, 1), "VALID")
    return feats


# ----------------------------------------------------------------------------
# Pure-JAX f32 reference for the head (same math as the PyTorch module).
# ----------------------------------------------------------------------------
def hed_head_reference(features, score_ws, biases, fuse_w, img_h, img_w):
    strides = (2, 4, 8, 16)
    hi = jax.lax.Precision.HIGHEST
    sos = [jnp.einsum("nchw,c->nhw", f, score_ws[k], precision=hi) + biases[k]
           for k, f in enumerate(features)]                            # (N, Hk, Wk)
    outs = [sos[0]]
    for idx, s in enumerate(strides):
        so = sos[idx + 1]
        hk, wk = so.shape[1], so.shape[2]
        ah = jnp.asarray(bilinear_upsample_matrix(hk, s, img_h))
        aw = jnp.asarray(bilinear_upsample_matrix(wk, s, img_w))
        outs.append(jnp.einsum("oh,nhw,pw->nop", ah, so, aw, precision=hi))
    fuse = sum(fuse_w[i] * outs[i] for i in range(5)) + biases[5]
    return [jax.nn.sigmoid(o)[:, None] for o in outs + [fuse]]


if __name__ == "__main__":
    key = jax.random.PRNGKey(0)
    N, C_IN, H, W = 2, 3, 32, 32
    CHANS = (8, 8, 8, 16, 16)   # channels of the 5 hooked feature maps

    key, kx = jax.random.split(key)
    x_nchw = jax.random.normal(kx, (N, C_IN, H, W), jnp.float32)   # PyTorch-style NCHW input
    x_nhwc = jnp.transpose(x_nchw, (0, 2, 3, 1))

    # deterministic backbone params
    bb_params, c_prev = [], C_IN
    for c in CHANS:
        key, k1, k2 = jax.random.split(key, 3)
        bb_params.append((jax.random.normal(k1, (3, 3, c_prev, c), jnp.float32) * 0.1,
                          jax.random.normal(k2, (c,), jnp.float32) * 0.01))
        c_prev = c

    # deterministic head params: score_dsn1..5 (1x1 conv Ck->1) and score_final (1x1 conv 5->1)
    score_ws, dsn_bs = [], []
    for c in CHANS:
        key, k1, k2 = jax.random.split(key, 3)
        score_ws.append(jax.random.normal(k1, (c,), jnp.float32) * 0.2)
        dsn_bs.append(jax.random.normal(k2, (), jnp.float32) * 0.1)
    key, k1, k2 = jax.random.split(key, 3)
    fuse_w = jax.random.normal(k1, (5,), jnp.float32) * 0.2
    fuse_b = jax.random.normal(k2, (), jnp.float32) * 0.1
    biases = jnp.stack(dsn_bs + [fuse_b])   # (6,)

    # backbone hook outputs (NCHW, like the torch module's hooks): scales 32,16,8,4,2
    feats_nhwc = backbone_features(x_nhwc, bb_params)
    features = [jnp.transpose(f, (0, 3, 1, 2)) for f in feats_nhwc]

    ref = hed_head_reference(features, score_ws, biases, fuse_w, H, W)

    # Run once with the VMEM-aware auto tile (TH == H here) and once with an
    # explicit 16-row tile to exercise the multi-row-tile pipeline (grid j > 0).
    for rt in (None, 16):
        results = hed_head(features, score_ws, biases, fuse_w, H, W, row_tile=rt)
        results = jax.block_until_ready(results)
        for r, rr in zip(results, ref):
            assert r.shape == (N, 1, H, W)
            # tolerance covers the intentional bf16 streaming of f1
            np.testing.assert_allclose(np.asarray(r), np.asarray(rr),
                                       rtol=1e-3, atol=1e-2)

    print("KERNEL_OK")
</pallas_src>

<mosaic_0001>
module attributes {stable_mosaic.version = 11 : i64} {
  func.func @_hed_head_kernel(%arg0: i32, %arg1: i32, %arg2: memref<1x8x32x32xbf16, #tpu.memory_space<vmem>>, %arg3: memref<1x16x32xf32, #tpu.memory_space<vmem>>, %arg4: memref<1x8x32xf32, #tpu.memory_space<vmem>>, %arg5: memref<1x4x32xf32, #tpu.memory_space<vmem>>, %arg6: memref<1x2x32xf32, #tpu.memory_space<vmem>>, %arg7: memref<32x16xf32, #tpu.memory_space<vmem>>, %arg8: memref<32x8xf32, #tpu.memory_space<vmem>>, %arg9: memref<32x4xf32, #tpu.memory_space<vmem>>, %arg10: memref<32x2xf32, #tpu.memory_space<vmem>>, %arg11: memref<8xf32, #tpu.memory_space<smem>>, %arg12: memref<2xf32, #tpu.memory_space<smem>>, %arg13: memref<5xf32, #tpu.memory_space<smem>>, %arg14: memref<1x1x32x32xf32, #tpu.memory_space<vmem>>, %arg15: memref<1x1x32x32xf32, #tpu.memory_space<vmem>>, %arg16: memref<1x1x32x32xf32, #tpu.memory_space<vmem>>, %arg17: memref<1x1x32x32xf32, #tpu.memory_space<vmem>>, %arg18: memref<1x1x32x32xf32, #tpu.memory_space<vmem>>, %arg19: memref<1x1x32x32xf32, #tpu.memory_space<vmem>>) attributes {dimension_semantics = [#tpu.dimension_semantics<parallel>, #tpu.dimension_semantics<parallel>], iteration_bounds = array<i64: 2, 1>, scalar_prefetch = 0 : i64, scratch_operands = 0 : i64, tpu.core_type = #tpu.core_type<tc>, window_params = [{transform_indices = @transform_0, window_bounds = array<i64: 1, 8, 32, 32>}, {pipeline_mode = #tpu.pipeline_mode<synchronous>, transform_indices = @transform_1, window_bounds = array<i64: 1, 16, 32>}, {pipeline_mode = #tpu.pipeline_mode<synchronous>, transform_indices = @transform_2, window_bounds = array<i64: 1, 8, 32>}, {pipeline_mode = #tpu.pipeline_mode<synchronous>, transform_indices = @transform_3, window_bounds = array<i64: 1, 4, 32>}, {pipeline_mode = #tpu.pipeline_mode<synchronous>, transform_indices = @transform_4, window_bounds = array<i64: 1, 2, 32>}, {transform_indices = @transform_5, window_bounds = array<i64: 32, 16>}, {transform_indices = @transform_6, window_bounds = array<i64: 32, 8>}, {transform_indices = @transform_7, window_bounds = array<i64: 32, 4>}, {transform_indices = @transform_8, window_bounds = array<i64: 32, 2>}, {transform_indices = @transform_9, window_bounds = array<i64: 8>}, {transform_indices = @transform_10, window_bounds = array<i64: 2>}, {transform_indices = @transform_11, window_bounds = array<i64: 5>}, {transform_indices = @transform_12, window_bounds = array<i64: 1, 1, 32, 32>}, {transform_indices = @transform_13, window_bounds = array<i64: 1, 1, 32, 32>}, {transform_indices = @transform_14, window_bounds = array<i64: 1, 1, 32, 32>}, {transform_indices = @transform_15, window_bounds = array<i64: 1, 1, 32, 32>}, {transform_indices = @transform_16, window_bounds = array<i64: 1, 1, 32, 32>}, {transform_indices = @transform_17, window_bounds = array<i64: 1, 1, 32, 32>}]} {
    %cst = arith.constant 0.000000e+00 : f32
    %0 = vector.broadcast %cst : f32 to vector<32x32xf32>
    %c0_i32 = arith.constant 0 : i32
    %c4_i32 = arith.constant 4 : i32
    %1 = arith.muli %c0_i32, %c4_i32 : i32
    %c0 = arith.constant 0 : index
    %2 = arith.index_cast %1 : i32 to index
    %c0_0 = arith.constant 0 : index
    %c0_1 = arith.constant 0 : index
    %3 = vector.load %arg2[%c0, %2, %c0_0, %c0_1] : memref<1x8x32x32xbf16, #tpu.memory_space<vmem>>, vector<1x1x32x32xbf16>
    %4 = vector.shape_cast %3 : vector<1x1x32x32xbf16> to vector<32x32xbf16>
    %5 = arith.extf %4 : vector<32x32xbf16> to vector<32x32xf32>
    %6 = arith.index_cast %1 : i32 to index
    %7 = memref.load %arg11[%6] : memref<8xf32, #tpu.memory_space<smem>>
    %8 = vector.broadcast %7 : f32 to vector<32x32xf32>
    %9 = arith.mulf %5, %8 : vector<32x32xf32>
    %10 = arith.addf %0, %9 : vector<32x32xf32>
    %c1_i32 = arith.constant 1 : i32
    %11 = arith.addi %1, %c1_i32 : i32
    %c0_2 = arith.constant 0 : index
    %12 = arith.index_cast %11 : i32 to index
    %c0_3 = arith.constant 0 : index
    %c0_4 = arith.constant 0 : index
    %13 = vector.load %arg2[%c0_2, %12, %c0_3, %c0_4] : memref<1x8x32x32xbf16, #tpu.memory_space<vmem>>, vector<1x1x32x32xbf16>
    %14 = vector.shape_cast %13 : vector<1x1x32x32xbf16> to vector<32x32xbf16>
    %15 = arith.extf %14 : vector<32x32xbf16> to vector<32x32xf32>
    %16 = arith.index_cast %11 : i32 to index
    %17 = memref.load %arg11[%16] : memref<8xf32, #tpu.memory_space<smem>>
    %18 = vector.broadcast %17 : f32 to vector<32x32xf32>
    %19 = arith.mulf %15, %18 : vector<32x32xf32>
    %20 = arith.addf %0, %19 : vector<32x32xf32>
    %c2_i32 = arith.constant 2 : i32
    %21 = arith.addi %1, %c2_i32 : i32
    %c0_5 = arith.constant 0 : index
    %22 = arith.index_cast %21 : i32 to index
    %c0_6 = arith.constant 0 : index
    %c0_7 = arith.constant 0 : index
    %23 = vector.load %arg2[%c0_5, %22, %c0_6, %c0_7] : memref<1x8x32x32xbf16, #tpu.memory_space<vmem>>, vector<1x1x32x32xbf16>
    %24 = vector.shape_cast %23 : vector<1x1x32x32xbf16> to vector<32x32xbf16>
    %25 = arith.extf %24 : vector<32x32xbf16> to vector<32x32xf32>
    %26 = arith.index_cast %21 : i32 to index
    %27 = memref.load %arg11[%26] : memref<8xf32, #tpu.memory_space<smem>>
    %28 = vector.broadcast %27 : f32 to vector<32x32xf32>
    %29 = arith.mulf %25, %28 : vector<32x32xf32>
    %30 = arith.addf %0, %29 : vector<32x32xf32>
    %c3_i32 = arith.constant 3 : i32
    %31 = arith.addi %1, %c3_i32 : i32
    %c0_8 = arith.constant 0 : index
    %32 = arith.index_cast %31 : i32 to index
    %c0_9 = arith.constant 0 : index
    %c0_10 = arith.constant 0 : index
    %33 = vector.load %arg2[%c0_8, %32, %c0_9, %c0_10] : memref<1x8x32x32xbf16, #tpu.memory_space<vmem>>, vector<1x1x32x32xbf16>
    %34 = vector.shape_cast %33 : vector<1x1x32x32xbf16> to vector<32x32xbf16>
    %35 = arith.extf %34 : vector<32x32xbf16> to vector<32x32xf32>
    %36 = arith.index_cast %31 : i32 to index
    %37 = memref.load %arg11[%36] : memref<8xf32, #tpu.memory_space<smem>>
    %38 = vector.broadcast %37 : f32 to vector<32x32xf32>
    %39 = arith.mulf %35, %38 : vector<32x32xf32>
    %40 = arith.addf %0, %39 : vector<32x32xf32>
    %c1_i32_11 = arith.constant 1 : i32
    %c4_i32_12 = arith.constant 4 : i32
    %41 = arith.muli %c1_i32_11, %c4_i32_12 : i32
    %c0_13 = arith.constant 0 : index
    %42 = arith.index_cast %41 : i32 to index
    %c0_14 = arith.constant 0 : index
    %c0_15 = arith.constant 0 : index
    %43 = vector.load %arg2[%c0_13, %42, %c0_14, %c0_15] : memref<1x8x32x32xbf16, #tpu.memory_space<vmem>>, vector<1x1x32x32xbf16>
    %44 = vector.shape_cast %43 : vector<1x1x32x32xbf16> to vector<32x32xbf16>
    %45 = arith.extf %44 : vector<32x32xbf16> to vector<32x32xf32>
    %46 = arith.index_cast %41 : i32 to index
    %47 = memref.load %arg11[%46] : memref<8xf32, #tpu.memory_space<smem>>
    %48 = vector.broadcast %47 : f32 to vector<32x32xf32>
    %49 = arith.mulf %45, %48 : vector<32x32xf32>
    %50 = arith.addf %10, %49 : vector<32x32xf32>
    %c1_i32_16 = arith.constant 1 : i32
    %51 = arith.addi %41, %c1_i32_16 : i32
    %c0_17 = arith.constant 0 : index
    %52 = arith.index_cast %51 : i32 to index
    %c0_18 = arith.constant 0 : index
    %c0_19 = arith.constant 0 : index
    %53 = vector.load %arg2[%c0_17, %52, %c0_18, %c0_19] : memref<1x8x32x32xbf16, #tpu.memory_space<vmem>>, vector<1x1x32x32xbf16>
    %54 = vector.shape_cast %53 : vector<1x1x32x32xbf16> to vector<32x32xbf16>
    %55 = arith.extf %54 : vector<32x32xbf16> to vector<32x32xf32>
    %56 = arith.index_cast %51 : i32 to index
    %57 = memref.load %arg11[%56] : memref<8xf32, #tpu.memory_space<smem>>
    %58 = vector.broadcast %57 : f32 to vector<32x32xf32>
    %59 = arith.mulf %55, %58 : vector<32x32xf32>
    %60 = arith.addf %20, %59 : vector<32x32xf32>
    %c2_i32_20 = arith.constant 2 : i32
    %61 = arith.addi %41, %c2_i32_20 : i32
    %c0_21 = arith.constant 0 : index
    %62 = arith.index_cast %61 : i32 to index
    %c0_22 = arith.constant 0 : index
    %c0_23 = arith.constant 0 : index
    %63 = vector.load %arg2[%c0_21, %62, %c0_22, %c0_23] : memref<1x8x32x32xbf16, #tpu.memory_space<vmem>>, vector<1x1x32x32xbf16>
    %64 = vector.shape_cast %63 : vector<1x1x32x32xbf16> to vector<32x32xbf16>
    %65 = arith.extf %64 : vector<32x32xbf16> to vector<32x32xf32>
    %66 = arith.index_cast %61 : i32 to index
    %67 = memref.load %arg11[%66] : memref<8xf32, #tpu.memory_space<smem>>
    %68 = vector.broadcast %67 : f32 to vector<32x32xf32>
    %69 = arith.mulf %65, %68 : vector<32x32xf32>
    %70 = arith.addf %30, %69 : vector<32x32xf32>
    %c3_i32_24 = arith.constant 3 : i32
    %71 = arith.addi %41, %c3_i32_24 : i32
    %c0_25 = arith.constant 0 : index
    %72 = arith.index_cast %71 : i32 to index
    %c0_26 = arith.constant 0 : index
    %c0_27 = arith.constant 0 : index
    %73 = vector.load %arg2[%c0_25, %72, %c0_26, %c0_27] : memref<1x8x32x32xbf16, #tpu.memory_space<vmem>>, vector<1x1x32x32xbf16>
    %74 = vector.shape_cast %73 : vector<1x1x32x32xbf16> to vector<32x32xbf16>
    %75 = arith.extf %74 : vector<32x32xbf16> to vector<32x32xf32>
    %76 = arith.index_cast %71 : i32 to index
    %77 = memref.load %arg11[%76] : memref<8xf32, #tpu.memory_space<smem>>
    %78 = vector.broadcast %77 : f32 to vector<32x32xf32>
    %79 = arith.mulf %75, %78 : vector<32x32xf32>
    %80 = arith.addf %40, %79 : vector<32x32xf32>
    %c2_i32_28 = arith.constant 2 : i32
    %81 = arith.addf %50, %60 : vector<32x32xf32>
    %82 = arith.addf %70, %80 : vector<32x32xf32>
    %83 = arith.addf %81, %82 : vector<32x32xf32>
    %c0_29 = arith.constant 0 : index
    %84 = memref.load %arg12[%c0_29] : memref<2xf32, #tpu.memory_space<smem>>
    %85 = vector.broadcast %84 : f32 to vector<32x32xf32>
    %86 = arith.addf %83, %85 : vector<32x32xf32>
    %87 = arith.negf %86 : vector<32x32xf32>
    %88 = math.exp %87 : vector<32x32xf32>
    %cst_30 = arith.constant 1.000000e+00 : f32
    %89 = vector.broadcast %cst_30 : f32 to vector<32x32xf32>
    %90 = arith.addf %89, %88 : vector<32x32xf32>
    %91 = arith.divf %89, %90 : vector<32x32xf32>
    %c0_31 = arith.constant 0 : index
    %c0_32 = arith.constant 0 : index
    %c0_33 = arith.constant 0 : index
    %c0_34 = arith.constant 0 : index
    %92 = vector.load %arg14[%c0_31, %c0_32, %c0_33, %c0_34] : memref<1x1x32x32xf32, #tpu.memory_space<vmem>>, vector<1x1x32x32xf32>
    %93 = vector.shape_cast %92 : vector<1x1x32x32xf32> to vector<32x32xf32>
    %94 = vector.shape_cast %91 : vector<32x32xf32> to vector<1x1x32x32xf32>
    tpu.vector_store %arg14[%c0_31, %c0_32, %c0_33, %c0_34], %94 {strides = array<i32>} : memref<1x1x32x32xf32, #tpu.memory_space<vmem>>, vector<1x1x32x32xf32>,
    %c0_35 = arith.constant 0 : index
    %95 = memref.load %arg13[%c0_35] : memref<5xf32, #tpu.memory_space<smem>>
    %96 = vector.broadcast %95 : f32 to vector<32x32xf32>
    %97 = arith.mulf %96, %86 : vector<32x32xf32>
    %c1 = arith.constant 1 : index
    %98 = memref.load %arg12[%c1] : memref<2xf32, #tpu.memory_space<smem>>
    %99 = vector.broadcast %98 : f32 to vector<32x32xf32>
    %100 = arith.addf %97, %99 : vector<32x32xf32>
    %c0_36 = arith.constant 0 : index
    %c0_37 = arith.constant 0 : index
    %101 = vector.load %arg7[%c0_36, %c0_37] : memref<32x16xf32, #tpu.memory_space<vmem>>, vector<32x16xf32>
    %c0_38 = arith.constant 0 : index
    %c0_39 = arith.constant 0 : index
    %c0_40 = arith.constant 0 : index
    %102 = vector.load %arg3[%c0_38, %c0_39, %c0_40] : memref<1x16x32xf32, #tpu.memory_space<vmem>>, vector<1x16x32xf32>
    %103 = vector.shape_cast %102 : vector<1x16x32xf32> to vector<16x32xf32>
    %cst_41 = arith.constant dense<0.000000e+00> : vector<32x32xf32>
    %104 = tpu.matmul %101, %103, %cst_41 {dimension_numbers = #tpu.dot_dimension_numbers<[1], [0], [0], [1], [0, 0, 1, 1], [], []>} : vector<32x16xf32>, vector<16x32xf32>, vector<32x32xf32> -> vector<32x32xf32>
    %105 = arith.negf %104 : vector<32x32xf32>
    %106 = math.exp %105 : vector<32x32xf32>
    %cst_42 = arith.constant 1.000000e+00 : f32
    %107 = vector.broadcast %cst_42 : f32 to vector<32x32xf32>
    %108 = arith.addf %107, %106 : vector<32x32xf32>
    %109 = arith.divf %107, %108 : vector<32x32xf32>
    %c0_43 = arith.constant 0 : index
    %c0_44 = arith.constant 0 : index
    %c0_45 = arith.constant 0 : index
    %c0_46 = arith.constant 0 : index
    %110 = vector.load %arg15[%c0_43, %c0_44, %c0_45, %c0_46] : memref<1x1x32x32xf32, #tpu.memory_space<vmem>>, vector<1x1x32x32xf32>
    %111 = vector.shape_cast %110 : vector<1x1x32x32xf32> to vector<32x32xf32>
    %112 = vector.shape_cast %109 : vector<32x32xf32> to vector<1x1x32x32xf32>
    tpu.vector_store %arg15[%c0_43, %c0_44, %c0_45, %c0_46], %112 {strides = array<i32>} : memref<1x1x32x32xf32, #tpu.memory_space<vmem>>, vector<1x1x32x32xf32>,
    %c1_47 = arith.constant 1 : index
    %113 = memref.load %arg13[%c1_47] : memref<5xf32, #tpu.memory_space<smem>>
    %114 = vector.broadcast %113 : f32 to vector<32x32xf32>
    %115 = arith.mulf %114, %104 : vector<32x32xf32>
    %116 = arith.addf %100, %115 : vector<32x32xf32>
    %c0_48 = arith.constant 0 : index
    %c0_49 = arith.constant 0 : index
    %117 = vector.load %arg8[%c0_48, %c0_49] : memref<32x8xf32, #tpu.memory_space<vmem>>, vector<32x8xf32>
    %c0_50 = arith.constant 0 : index
    %c0_51 = arith.constant 0 : index
    %c0_52 = arith.constant 0 : index
    %118 = vector.load %arg4[%c0_50, %c0_51, %c0_52] : memref<1x8x32xf32, #tpu.memory_space<vmem>>, vector<1x8x32xf32>
    %119 = vector.shape_cast %118 : vector<1x8x32xf32> to vector<8x32xf32>
    %cst_53 = arith.constant dense<0.000000e+00> : vector<32x32xf32>
    %120 = tpu.matmul %117, %119, %cst_53 {dimension_numbers = #tpu.dot_dimension_numbers<[1], [0], [0], [1], [0, 0, 1, 1], [], []>} : vector<32x8xf32>, vector<8x32xf32>, vector<32x32xf32> -> vector<32x32xf32>
    %121 = arith.negf %120 : vector<32x32xf32>
    %122 = math.exp %121 : vector<32x32xf32>
    %cst_54 = arith.constant 1.000000e+00 : f32
    %123 = vector.broadcast %cst_54 : f32 to vector<32x32xf32>
    %124 = arith.addf %123, %122 : vector<32x32xf32>
    %125 = arith.divf %123, %124 : vector<32x32xf32>
    %c0_55 = arith.constant 0 : index
    %c0_56 = arith.constant 0 : index
    %c0_57 = arith.constant 0 : index
    %c0_58 = arith.constant 0 : index
    %126 = vector.load %arg16[%c0_55, %c0_56, %c0_57, %c0_58] : memref<1x1x32x32xf32, #tpu.memory_space<vmem>>, vector<1x1x32x32xf32>
    %127 = vector.shape_cast %126 : vector<1x1x32x32xf32> to vector<32x32xf32>
    %128 = vector.shape_cast %125 : vector<32x32xf32> to vector<1x1x32x32xf32>
    tpu.vector_store %arg16[%c0_55, %c0_56, %c0_57, %c0_58], %128 {strides = array<i32>} : memref<1x1x32x32xf32, #tpu.memory_space<vmem>>, vector<1x1x32x32xf32>,
    %c2 = arith.constant 2 : index
    %129 = memref.load %arg13[%c2] : memref<5xf32, #tpu.memory_space<smem>>
    %130 = vector.broadcast %129 : f32 to vector<32x32xf32>
    %131 = arith.mulf %130, %120 : vector<32x32xf32>
    %132 = arith.addf %116, %131 : vector<32x32xf32>
    %c0_59 = arith.constant 0 : index
    %c0_60 = arith.constant 0 : index
    %133 = vector.load %arg9[%c0_59, %c0_60] : memref<32x4xf32, #tpu.memory_space<vmem>>, vector<32x4xf32>
    %c0_61 = arith.constant 0 : index
    %c0_62 = arith.constant 0 : index
    %c0_63 = arith.constant 0 : index
    %134 = vector.load %arg5[%c0_61, %c0_62, %c0_63] : memref<1x4x32xf32, #tpu.memory_space<vmem>>, vector<1x4x32xf32>
    %135 = vector.shape_cast %134 : vector<1x4x32xf32> to vector<4x32xf32>
    %cst_64 = arith.constant dense<0.000000e+00> : vector<32x32xf32>
    %136 = tpu.matmul %133, %135, %cst_64 {dimension_numbers = #tpu.dot_dimension_numbers<[1], [0], [0], [1], [0, 0, 1, 1], [], []>} : vector<32x4xf32>, vector<4x32xf32>, vector<32x32xf32> -> vector<32x32xf32>
    %137 = arith.negf %136 : vector<32x32xf32>
    %138 = math.exp %137 : vector<32x32xf32>
    %cst_65 = arith.constant 1.000000e+00 : f32
    %139 = vector.broadcast %cst_65 : f32 to vector<32x32xf32>
    %140 = arith.addf %139, %138 : vector<32x32xf32>
    %141 = arith.divf %139, %140 : vector<32x32xf32>
    %c0_66 = arith.constant 0 : index
    %c0_67 = arith.constant 0 : index
    %c0_68 = arith.constant 0 : index
    %c0_69 = arith.constant 0 : index
    %142 = vector.load %arg17[%c0_66, %c0_67, %c0_68, %c0_69] : memref<1x1x32x32xf32, #tpu.memory_space<vmem>>, vector<1x1x32x32xf32>
    %143 = vector.shape_cast %142 : vector<1x1x32x32xf32> to vector<32x32xf32>
    %144 = vector.shape_cast %141 : vector<32x32xf32> to vector<1x1x32x32xf32>
    tpu.vector_store %arg17[%c0_66, %c0_67, %c0_68, %c0_69], %144 {strides = array<i32>} : memref<1x1x32x32xf32, #tpu.memory_space<vmem>>, vector<1x1x32x32xf32>,
    %c3 = arith.constant 3 : index
    %145 = memref.load %arg13[%c3] : memref<5xf32, #tpu.memory_space<smem>>
    %146 = vector.broadcast %145 : f32 to vector<32x32xf32>
    %147 = arith.mulf %146, %136 : vector<32x32xf32>
    %148 = arith.addf %132, %147 : vector<32x32xf32>
    %c0_70 = arith.constant 0 : index
    %c0_71 = arith.constant 0 : index
    %149 = vector.load %arg10[%c0_70, %c0_71] : memref<32x2xf32, #tpu.memory_space<vmem>>, vector<32x2xf32>
    %c0_72 = arith.constant 0 : index
    %c0_73 = arith.constant 0 : index
    %c0_74 = arith.constant 0 : index
    %150 = vector.load %arg6[%c0_72, %c0_73, %c0_74] : memref<1x2x32xf32, #tpu.memory_space<vmem>>, vector<1x2x32xf32>
    %151 = vector.shape_cast %150 : vector<1x2x32xf32> to vector<2x32xf32>
    %cst_75 = arith.constant dense<0.000000e+00> : vector<32x32xf32>
    %152 = tpu.matmul %149, %151, %cst_75 {dimension_numbers = #tpu.dot_dimension_numbers<[1], [0], [0], [1], [0, 0, 1, 1], [], []>} : vector<32x2xf32>, vector<2x32xf32>, vector<32x32xf32> -> vector<32x32xf32>
    %153 = arith.negf %152 : vector<32x32xf32>
    %154 = math.exp %153 : vector<32x32xf32>
    %cst_76 = arith.constant 1.000000e+00 : f32
    %155 = vector.broadcast %cst_76 : f32 to vector<32x32xf32>
    %156 = arith.addf %155, %154 : vector<32x32xf32>
    %157 = arith.divf %155, %156 : vector<32x32xf32>
    %c0_77 = arith.constant 0 : index
    %c0_78 = arith.constant 0 : index
    %c0_79 = arith.constant 0 : index
    %c0_80 = arith.constant 0 : index
    %158 = vector.load %arg18[%c0_77, %c0_78, %c0_79, %c0_80] : memref<1x1x32x32xf32, #tpu.memory_space<vmem>>, vector<1x1x32x32xf32>
    %159 = vector.shape_cast %158 : vector<1x1x32x32xf32> to vector<32x32xf32>
    %160 = vector.shape_cast %157 : vector<32x32xf32> to vector<1x1x32x32xf32>
    tpu.vector_store %arg18[%c0_77, %c0_78, %c0_79, %c0_80], %160 {strides = array<i32>} : memref<1x1x32x32xf32, #tpu.memory_space<vmem>>, vector<1x1x32x32xf32>,
    %c4 = arith.constant 4 : index
    %161 = memref.load %arg13[%c4] : memref<5xf32, #tpu.memory_space<smem>>
    %162 = vector.broadcast %161 : f32 to vector<32x32xf32>
    %163 = arith.mulf %162, %152 : vector<32x32xf32>
    %164 = arith.addf %148, %163 : vector<32x32xf32>
    %165 = arith.negf %164 : vector<32x32xf32>
    %166 = math.exp %165 : vector<32x32xf32>
    %cst_81 = arith.constant 1.000000e+00 : f32
    %167 = vector.broadcast %cst_81 : f32 to vector<32x32xf32>
    %168 = arith.addf %167, %166 : vector<32x32xf32>
    %169 = arith.divf %167, %168 : vector<32x32xf32>
    %c0_82 = arith.constant 0 : index
    %c0_83 = arith.constant 0 : index
    %c0_84 = arith.constant 0 : index
    %c0_85 = arith.constant 0 : index
    %170 = vector.load %arg19[%c0_82, %c0_83, %c0_84, %c0_85] : memref<1x1x32x32xf32, #tpu.memory_space<vmem>>, vector<1x1x32x32xf32>
    %171 = vector.shape_cast %170 : vector<1x1x32x32xf32> to vector<32x32xf32>
    %172 = vector.shape_cast %169 : vector<32x32xf32> to vector<1x1x32x32xf32>
    tpu.vector_store %arg19[%c0_82, %c0_83, %c0_84, %c0_85], %172 {strides = array<i32>} : memref<1x1x32x32xf32, #tpu.memory_space<vmem>>, vector<1x1x32x32xf32>,
    return
  }
  func.func @transform_0(%arg0: i32, %arg1: i32) -> (i32, i32, i32, i32) {
    %c0_i32 = arith.constant 0 : i32
    %c0_i32_0 = arith.constant 0 : i32
    %c0_i32_1 = arith.constant 0 : i32
    return %arg0, %c0_i32, %arg1, %c0_i32_0 : i32, i32, i32, i32
  }
  func.func @transform_1(%arg0: i32, %arg1: i32) -> (i32, i32, i32) {
    %c0_i32 = arith.constant 0 : i32
    %c0_i32_0 = arith.constant 0 : i32
    %c0_i32_1 = arith.constant 0 : i32
    return %arg0, %c0_i32, %c0_i32_0 : i32, i32, i32
  }
  func.func @transform_2(%arg0: i32, %arg1: i32) -> (i32, i32, i32) {
    %c0_i32 = arith.constant 0 : i32
    %c0_i32_0 = arith.constant 0 : i32
    %c0_i32_1 = arith.constant 0 : i32
    return %arg0, %c0_i32, %c0_i32_0 : i32, i32, i32
  }
  func.func @transform_3(%arg0: i32, %arg1: i32) -> (i32, i32, i32) {
    %c0_i32 = arith.constant 0 : i32
    %c0_i32_0 = arith.constant 0 : i32
    %c0_i32_1 = arith.constant 0 : i32
    return %arg0, %c0_i32, %c0_i32_0 : i32, i32, i32
  }
  func.func @transform_4(%arg0: i32, %arg1: i32) -> (i32, i32, i32) {
    %c0_i32 = arith.constant 0 : i32
    %c0_i32_0 = arith.constant 0 : i32
    %c0_i32_1 = arith.constant 0 : i32
    return %arg0, %c0_i32, %c0_i32_0 : i32, i32, i32
  }
  func.func @transform_5(%arg0: i32, %arg1: i32) -> (i32, i32) {
    %c0_i32 = arith.constant 0 : i32
    %c0_i32_0 = arith.constant 0 : i32
    return %arg1, %c0_i32 : i32, i32
  }
  func.func @transform_6(%arg0: i32, %arg1: i32) -> (i32, i32) {
    %c0_i32 = arith.constant 0 : i32
    %c0_i32_0 = arith.constant 0 : i32
    return %arg1, %c0_i32 : i32, i32
  }
  func.func @transform_7(%arg0: i32, %arg1: i32) -> (i32, i32) {
    %c0_i32 = arith.constant 0 : i32
    %c0_i32_0 = arith.constant 0 : i32
    return %arg1, %c0_i32 : i32, i32
  }
  func.func @transform_8(%arg0: i32, %arg1: i32) -> (i32, i32) {
    %c0_i32 = arith.constant 0 : i32
    %c0_i32_0 = arith.constant 0 : i32
    return %arg1, %c0_i32 : i32, i32
  }
  func.func @transform_9(%arg0: i32, %arg1: i32) -> i32 {
    %c0_i32 = arith.constant 0 : i32
    %c0_i32_0 = arith.constant 0 : i32
    return %c0_i32 : i32
  }
  func.func @transform_10(%arg0: i32, %arg1: i32) -> i32 {
    %c0_i32 = arith.constant 0 : i32
    %c0_i32_0 = arith.constant 0 : i32
    return %c0_i32 : i32
  }
  func.func @transform_11(%arg0: i32, %arg1: i32) -> i32 {
    %c0_i32 = arith.constant 0 : i32
    %c0_i32_0 = arith.constant 0 : i32
    return %c0_i32 : i32
  }
  func.func @transform_12(%arg0: i32, %arg1: i32) -> (i32, i32, i32, i32) {
    %c0_i32 = arith.constant 0 : i32
    %c0_i32_0 = arith.constant 0 : i32
    %c0_i32_1 = arith.constant 0 : i32
    return %arg0, %c0_i32, %arg1, %c0_i32_0 : i32, i32, i32, i32
  }
  func.func @transform_13(%arg0: i32, %arg1: i32) -> (i32, i32, i32, i32) {
    %c0_i32 = arith.constant 0 : i32
    %c0_i32_0 = arith.constant 0 : i32
    %c0_i32_1 = arith.constant 0 : i32
    return %arg0, %c0_i32, %arg1, %c0_i32_0 : i32, i32, i32, i32
  }
  func.func @transform_14(%arg0: i32, %arg1: i32) -> (i32, i32, i32, i32) {
    %c0_i32 = arith.constant 0 : i32
    %c0_i32_0 = arith.constant 0 : i32
    %c0_i32_1 = arith.constant 0 : i32
    return %arg0, %c0_i32, %arg1, %c0_i32_0 : i32, i32, i32, i32
  }
  func.func @transform_15(%arg0: i32, %arg1: i32) -> (i32, i32, i32, i32) {
    %c0_i32 = arith.constant 0 : i32
    %c0_i32_0 = arith.constant 0 : i32
    %c0_i32_1 = arith.constant 0 : i32
    return %arg0, %c0_i32, %arg1, %c0_i32_0 : i32, i32, i32, i32
  }
  func.func @transform_16(%arg0: i32, %arg1: i32) -> (i32, i32, i32, i32) {
    %c0_i32 = arith.constant 0 : i32
    %c0_i32_0 = arith.constant 0 : i32
    %c0_i32_1 = arith.constant 0 : i32
    return %arg0, %c0_i32, %arg1, %c0_i32_0 : i32, i32, i32, i32
  }
  func.func @transform_17(%arg0: i32, %arg1: i32) -> (i32, i32, i32, i32) {
    %c0_i32 = arith.constant 0 : i32
    %c0_i32_0 = arith.constant 0 : i32
    %c0_i32_1 = arith.constant 0 : i32
    return %arg0, %c0_i32, %arg1, %c0_i32_0 : i32, i32, i32, i32
  }
}

</mosaic_0001>

<bundles_post_ra>
// kernel: tpu_custom_call.1
= control target key start
LH: loop header
LB: loop body
LE: loop exit
PB: predicated region body
PF: predicated region fallthrough
CT: control target
= control target key end

     0   :  { %s3762_s0 = inlined_call_operand.hbm [shape: bf16[2,8,32,32], index: 0, kind: input, shape index: {}]   ;;  %s3763_s1 = inlined_call_operand.vmem [shape: f32[2,16,32], index: 1, kind: input, shape index: {}]   ;;  %s3764_s2 = inlined_call_operand.vmem [shape: f32[2,8,32], index: 2, kind: input, shape index: {}]   ;;  %s3765_s3 = inlined_call_operand.vmem [shape: f32[2,4,32], index: 3, kind: input, shape index: {}]   ;;  %s3766_s4 = inlined_call_operand.vmem [shape: f32[2,2,32], index: 4, kind: input, shape index: {}]   ;;  %s3767_s5 = inlined_call_operand.vmem [shape: f32[32,16], index: 5, kind: input, shape index: {}]   ;;  %s3768_s6 = inlined_call_operand.vmem [shape: f32[32,8], index: 6, kind: input, shape index: {}]   ;;  %s3769_s7 = inlined_call_operand.vmem [shape: f32[32,4], index: 7, kind: input, shape index: {}]   ;;  %s3770_s8 = inlined_call_operand.vmem [shape: f32[32,2], index: 8, kind: input, shape index: {}]   ;;  %s3771_s9 = inlined_call_operand.vmem [shape: f32[8], index: 9, kind: input, shape index: {}]   ;;  %s3772_s10 = inlined_call_operand.vmem [shape: f32[2], index: 10, kind: input, shape index: {}]   ;;  %s3773_s11 = inlined_call_operand.vmem [shape: f32[5], index: 11, kind: input, shape index: {}]   ;;  %s3774_s12 = inlined_call_operand.hbm [shape: f32[2,1,32,32], index: 12, kind: output, shape index: {0}]   ;;  %s3775_s13 = inlined_call_operand.hbm [shape: f32[2,1,32,32], index: 13, kind: output, shape index: {1}]   ;;  %s3776_s14 = inlined_call_operand.hbm [shape: f32[2,1,32,32], index: 14, kind: output, shape index: {2}]   ;;  %s3777_s15 = inlined_call_operand.hbm [shape: f32[2,1,32,32], index: 15, kind: output, shape index: {3}]   ;;  %s3778_s16 = inlined_call_operand.hbm [shape: f32[2,1,32,32], index: 16, kind: output, shape index: {4}]   ;;  %s3779_s17 = inlined_call_operand.hbm [shape: f32[2,1,32,32], index: 17, kind: output, shape index: {5}]  }
   0x1   :  { %3801 = sst [smem:[#allocation33_spill]] %s3762_s0 }
   0x2   :  { %3802 = sst [smem:[#allocation34_spill]] %s3763_s1 }
   0x3   :  { %3803 = sst [smem:[#allocation35_spill]] %s3764_s2 }
   0x4   :  { %3804 = sst [smem:[#allocation36_spill]] %s3771_s9 }
   0x5   :  { %3805 = sst [smem:[#allocation37_spill]] %s3772_s10 }
   0x6   :  { %3806 = sst [smem:[#allocation38_spill]] %s3773_s11 }
   0x7   :  { %3807 = sst [smem:[#allocation39_spill]] %s3776_s14 }
   0x8   :  { %3808 = sst [smem:[#allocation40_spill]] %s3777_s15 }
   0x9   :  { %3809 = sst [smem:[#allocation41_spill]] %s3778_s16 }
   0xa   :  { %3810 = sst [smem:[#allocation42_spill]] %s3779_s17 }
   0xb   :  { %23 = vsyncpa [#allocation3], 0 }
   0xc   :  { %25 = vsyncpa [#allocation3 + $0x1], 0 }
   0xd   :  { %26 = vsyncpa [#allocation5], 0 }
   0xe   :  { %27 = vsyncpa [#allocation8], 0 }
   0xf   :  { %28 = vsyncpa [#allocation4], 0 }
  0x10   :  { %30 = vsyncpa [#allocation4 + $0x1], 0 }
  0x11   :  { %31 = vsyncpa [#allocation12], 0 }
  0x12   :  { %33 = vsyncpa [#allocation12 + $0x1], 0 }
  0x13   :  { %34 = vsyncpa [#allocation15], 0 }
  0x14   :  { %36 = vsyncpa [#allocation15 + $0x1], 0 }
  0x15   :  { %37 = vsyncpa [#allocation18], 0 }
  0x16   :  { %39 = vsyncpa [#allocation18 + $0x1], 0  ;;  %s3113_s24 = smov 0   ;;  %s3115_s25 = smov 0  }
  0x17   :  { %s3117_s26 = smov 0   ;;  %s3119_s27 = smov 0  }
  0x18   :  { %s3121_s28 = smov 0   ;;  %s3123_s29 = smov 0  }
  0x19 LB: > { %3811 = sst [smem:[#allocation26_spill]] %s2987_s24  ;;  %s3144_s0 = sadd.s32 4294967295, %s3007_s29   ;;  %s3007_s29 = sphi %s3123_s29, %s45_s29   ;;  %s3003_s28 = sphi %s3121_s28, %s3855_s28   ;;  %s2999_s27 = sphi %s3119_s27, %s3854_s27   ;;  %s2995_s26 = sphi %s3117_s26, %s3853_s26   ;;  %s2991_s25 = sphi %s3115_s25, %s3852_s25   ;;  %s2987_s24 = sphi %s3113_s24, %s3851_s24  }
  0x1a   : > { %3812 = sst [smem:[#allocation27_spill]] %s2991_s25  ;;  %s3781_s30 = sadd.s32 4294967294, %s3007_s29  }
  0x1b   : > { %3813 = sst [smem:[#allocation28_spill]] %s2995_s26  ;;  %p79_p0 = scmp.ne.s32.totalorder %s2991_s25, %s2987_s24 }
  0x1c   : > { %3814 = sst [smem:[#allocation29_spill]] %s3003_s28  ;;  %p3785_p1 = scmp.eq.s32.totalorder %s3144_s0, 0 }
  0x1d   : > { %p382_p3 = scmp.eq.s32.totalorder %s3781_s30, 1  ;;  %p2196_p5 = scmp.ge.s32.totalorder %s3007_s29, 1 }
  0x1e   : > { %p3155_p4 = por %p3785_p1, %p79_p0  ;;  %p529_p7 = scmp.lt.s32.totalorder %s3007_s29, 3 }
  0x1f   : > { %p3160_p6 = por %p382_p3, %p79_p0  ;;  %s3818_s10 = sld [smem:[#allocation37_spill]] }
  0x20   : > { %s3815_s18 = scalar_select %p3155_p4, 1, 0 }
  0x21   : > { %s3816_s19 = scalar_select %p3160_p6, 1, 0 }
  0x22   : > { %p3168_p8 = pnand %p2196_p5, %p529_p7  ;;  %s3820_s9 = sld [smem:[#allocation36_spill]] }
  0x23   : > { %3817 = sst [smem:[#allocation30_spill]] %s3816_s19  ;;  %s3822_s11 = sld [smem:[#allocation38_spill]] }
  0x24   : > { %s3819_s22 = scalar_select %p3168_p8, 1, 0 }
  0x25   : > { %s618_s21 = sshll.u32 %s3818_s10, 4  ;;  %p2498_p10 = pneg %p3168_p8  ;;  %s619_s21 = int_to_ptr.vmem [resolvable:$true] %s618_s21 }
  0x26   : > { %s2690_s17 = scalar_lea.vmem %s619_s21, 16  ;;  %p2698_p5 = scmp.lt.s32.totalorder %s619_s21, %s619_s21 }
  0x27   : > { %p3180_p11 = pnand %p2498_p10, %p3785_p1  ;;  %p2691_p12 = scmp.ne.s32.totalorder %s619_s21, %s2690_s17 }
  0x28   : > { %s607_s24 = sshll.u32 %s3820_s9, 4  ;;  %p2699_p7 = scmp.lt.s32.totalorder %s2690_s17, %s2690_s17  ;;  %s608_s24 = int_to_ptr.vmem [resolvable:$true] %s607_s24 }
  0x29   : > { %s629_s10 = sshll.u32 %s3822_s11, 4  ;;  %p2692_p13 = pneg %p3180_p11  ;;  %s3187_s10 = int_to_ptr.vmem [resolvable:$true] %s629_s10 }
  0x2a   : > { %p2700_p10 = por %p2699_p7, %p2698_p5 }
  0x2b   : > { %p2693_p0 = pnand %p2692_p13, %p2691_p12 }
  0x2d   : > { %p2694_p3 = pneg %p2693_p0 }
  0x2f   : > { %p2701_p9 = pnand %p2700_p10, %p2694_p3 }
  0x31   : > { %2704 = shalt.err (!%p2701_p9)
}
  0x32   : > { %s3009_s30 = smov [#allocation7]   ;;  %s2705_s23 = scalar_lea.vmem %s608_s24, 16 }
  0x33   : > { %2504 = dma.vmem_to_smem (!%p3180_p11), %s619_s21, 16, %s3009_s30, [#allocation8]  }
  0x34   : > { %p2706_p1 = scmp.ne.s32.totalorder %s608_s24, %s2705_s23  ;;  %p2713_p4 = scmp.lt.s32.totalorder %s608_s24, %s608_s24 }
  0x35   : > { %p2714_p8 = scmp.lt.s32.totalorder %s2705_s23, %s2705_s23 }
  0x36   : > { %p2708_p2 = pnand %p2706_p1, %p2692_p13 }
  0x37   : > { %p2715_p12 = por %p2714_p8, %p2713_p4 }
  0x38   : > { %p2709_p6 = pneg %p2708_p2 }
  0x3a   : > { %p2716_p0 = pnand %p2715_p12, %p2709_p6 }
  0x3c   : > { %2719 = shalt.err (!%p2716_p0)
}
  0x3d   : > { %s3010_s17 = smov [#allocation6]   ;;  %s2720_s21 = scalar_lea.vmem %s3187_s10, 16 }
  0x3e   : > { %2501 = dma.vmem_to_smem (!%p3180_p11), %s608_s24, 16, %s3010_s17, [#allocation5]  }
  0x3f   : > { %p2721_p9 = scmp.ne.s32.totalorder %s3187_s10, %s2720_s21  ;;  %p2728_p2 = scmp.lt.s32.totalorder %s3187_s10, %s3187_s10 }
  0x40   : > { %p2729_p5 = scmp.lt.s32.totalorder %s2720_s21, %s2720_s21 }
  0x41   : > { %p2723_p3 = pnand %p2721_p9, %p2692_p13 }
  0x42   : > { %p2730_p4 = por %p2729_p5, %p2728_p2 }
  0x43   : > { %p2724_p1 = pneg %p2723_p3 }
  0x45   : > { %p2731_p6 = pnand %p2730_p4, %p2724_p1 }
  0x47   : > { %2734 = shalt.err (!%p2731_p6)
}
  0x48   : > { %s3011_s1 = smov [#allocation9]   ;;  %s66_s24 = sadd.s32 1, %s2995_s26 }
  0x49   : > { %2507 = dma.vmem_to_smem (!%p3180_p11), %s3187_s10, 16, %s3011_s1, [#allocation8]  }
  0x4a   : > { %s57_s20 = sadd.s32 1, %s3003_s28  ;;  %p73_p8 = scmp.ne.s32.totalorder %s2995_s26, %s2991_s25 }
  0x4b   : > { %p59_p13 = scmp.ge.s32.totalorder %s57_s20, 2  ;;  %p74_p7 = scmp.eq.s32.totalorder %s3007_s29, 0 }
  0x4c   : > { %p3823_p10 = scmp.eq.s32.totalorder %s3144_s0, 1  ;;  %p2534_p0 = scmp.lt.s32.totalorder %s3007_s29, 2 }
  0x4d   : > { %s3857_s20 = smov (%p59_p13, %s57_s20), 0  ;;  %p75_p9 = por %p74_p7, %p73_p8 }
  0x4e   : > { %p3218_p12 = por %p3823_p10, %p73_p8  ;;  %3825 = sst [smem:[#allocation31_spill]] %s3857_s20 }
  0x4f   : > { %s640_s30 = sand.u32 1, %s2995_s26   ;;  %s61_s23 = ssub.s32 %s3003_s28, %s3857_s20 }
  0x50   : > { %p64_p3 = scmp.eq.s32.totalorder %s61_s23, 0  ;;  %s2205_s10 = sshll.u32 %s640_s30, 7 }
  0x51   : > { %s2326_s17 = sshll.u32 %s3003_s28, 11  ;;  %s3827_s11 = sld [smem:[#allocation33_spill]] }
  0x52   : > { %s3230_s21 = scalar_select %p64_p3, %s2995_s26, %s66_s24  }
  0x53   : > { %s644_s15 = scalar_lea.vmem [#allocation2], %s2205_s10  ;;  %p3241_p11 = pnand %p2534_p0, %p75_p9 }
  0x54   : > { %3826 = sst [smem:[#allocation32_spill]] %s3230_s21  ;;  %s653_s14 = sshll.u32 %s644_s15, 4  ;;  %s3237_s14 = int_to_ptr.vmem [resolvable:$true] %s653_s14 }
  0x55   : > { %s3245_s24 = scalar_lea.sflag [#allocation3], %s640_s30  ;;  %p2737_p2 = pneg %p3241_p11 }
  0x57   : > { %s3235_s16 = scalar_lea.hbm %s3827_s11, %s2326_s17  ;;  %s2740_s17 = scalar_lea.hbm %s3827_s11, 4096 }
  0x58   : > { %s2735_s9 = scalar_lea.hbm %s3235_s16, 2048  ;;  %p2741_p6 = scmp.lt.u32.totalorder %s3235_s16, %s3827_s11 }
  0x59   : > { %p2736_p1 = scmp.ne.s32.totalorder %s3235_s16, %s2735_s9  ;;  %p2742_p8 = scmp.lt.u32.totalorder %s2740_s17, %s2735_s9 }
  0x5a   : > { %p2744_p7 = scmp.lt.u32.totalorder %s2735_s9, %s3235_s16 }
  0x5b   : > { %p2738_p5 = pnand %p2737_p2, %p2736_p1  ;;  %p2743_p13 = por %p2742_p8, %p2741_p6 }
  0x5d   : > { %p2739_p4 = pneg %p2738_p5  ;;  %p2745_p10 = por %p2744_p7, %p2743_p13 }
  0x5f   : > { %p2746_p0 = pnand %p2745_p10, %p2739_p4 }
  0x61   : > { %2749 = shalt.err (!%p2746_p0)
}
  0x62   : > { %s2750_s30 = scalar_lea.vmem %s3237_s14, 2048  ;;  %s3012_s15 = smov [#allocation2]  }
  0x63   : > { %p2751_p9 = scmp.ne.s32.totalorder %s3237_s14, %s2750_s30  ;;  %s2755_s10 = sshll.u32 %s3012_s15, 4  ;;  %s2756_s10 = int_to_ptr.vmem [resolvable:$false] %s2755_s10 }
  0x64   : > { %s2757_s20 = scalar_lea.vmem %s2756_s10, 4096  ;;  %p2758_p5 = scmp.lt.s32.totalorder %s3237_s14, %s2756_s10 }
  0x65   : > { %p2753_p3 = pnand %p2751_p9, %p2737_p2  ;;  %p2759_p6 = scmp.lt.s32.totalorder %s2757_s20, %s2750_s30 }
  0x67   : > { %p2754_p1 = pneg %p2753_p3  ;;  %p2760_p8 = por %p2759_p6, %p2758_p5 }
  0x69   : > { %p2761_p13 = pnand %p2760_p8, %p2754_p1 }
  0x6b   : > { %2764 = shalt.err (!%p2761_p13)
}
  0x6c   : > { %s3013_s9 = smov 64   ;;  %s3014_s17 = smov 4  }
  0x6d   : > { %2511 = dma.hbm_to_vmem [thread:$0]  (!%p3241_p11), %s3235_s16, 2048, %s3237_s14, %s3245_s24, %s3013_s9, %s3013_s9, %s3014_s17  }
  0x6e   : > { %p3829_p2 = scmp.ne.s32.totalorder %s3819_s22, 0 }
  0x6f   : > { %s3276_s1 = sand.u32 (!%p3829_p2), 1, %s2991_s25   ;;  %p3830_p4 = scmp.ne.s32.totalorder (!%p3829_p2), %s3815_s18, 0 }
  0x70   : > { %665 = sbr.rel (%p3829_p2) target bundleno = 503 (0x1f7), region = 68  ;;  %s2209_s30 = sshll.u32 (!%p3829_p2), %s3276_s1, 7 }
  0x71   : > { %s668_s15 = scalar_lea.sflag (!%p3829_p2), [#allocation3], %s3276_s1  ;;  %s3280_s10 = scalar_lea.vmem (!%p3829_p2), [#allocation2], %s2209_s30 }
  0x77   : > { %2958 = dma.done.wait (%p3830_p4), %s668_s15, 2048  }
  0x78   : > { %2960 = vsyncadd (%p3830_p4), %s668_s15, 4294965248  ;;  %p3831_p11 = scmp.eq.s32.totalorder %s3144_s0, 0 }
  0x7a   : > { %2962 = dma.done.wait (%p3831_p11), [#allocation5], 16   ;;  %p3832_p7 = pmov %p3831_p11 }
  0x7c   : > { %2964 = vsyncadd (%p3832_p7), [#allocation5], 4294967280  ;;  %p3833_p10 = pmov %p3832_p7 }
  0x7d   : > { %p3834_p0 = pmov %p3832_p7 }
  0x7e   : > { %2966 = dma.done.wait (%p3833_p10), [#allocation8], 32  }
  0x7f   : > { %2968 = vsyncadd (%p3834_p0), [#allocation8], 4294967264 }
  0x80   : > { %688 = sfence }
  0x81   : > { %p798_p9 = scmp.lt.s32.totalorder %s2999_s27, 1  ;;  %v1197_v0 = vld [vmem:[%s3768_s6] sm:$0xff]  ;;  %vm1202_vm0 = vcmask 64512   ;;  %vm1061_vm1 = vcmask 130048   ;;  %s3835_s2 = sld [smem:[#allocation35_spill]]  ;;  %v1198_v2 = vld [vmem:[%s3768_s6 + $0x8] sm:$0xff] }
  0x82   : > { %v1055_v1 = vld [vmem:[%s3767_s5] sm:$0xff]  ;;  %2446 = vmatprep.mubr.msk.f32.mxu1 %vm1202_vm0, %v1197_v0  ;;  %s3836_s16 = sld [smem:[#allocation34_spill]]  ;;  %vm1356_vm2 = vcmask 1043456   ;;  %v1199_v8 = vld [vmem:[%s3768_s6 + $0x10] sm:$0xff]  ;;  %vm1501_vm3 = vcmask 1041408   ;;  %v1056_v10 = vld [vmem:[%s3767_s5 + $0x8] sm:$0xff] }
  0x83   : > { %s799_s23 = scalar_select %p798_p9, %s2999_s27, 1  ;;  %2438 = vmatprep.mubr.msk.f32.mxu0 %vm1061_vm1, %v1055_v1  ;;  %v1200_v11 = vld [vmem:[%s3768_s6 + $0x18] sm:$0xff]  ;;  %v1057_v12 = vld [vmem:[%s3767_s5 + $0x10] sm:$0xff]  ;;  %v1338_v13 = vld [vmem:[%s3769_s7] sm:$0xff]  ;;  %vm1343_vm4 = vcmask 31744   ;;  %vm1488_vm5 = vcmask 15360  }
  0x84   : > { %v1058_v14 = vld [vmem:[%s3767_s5 + $0x18] sm:$0xff]  ;;  %v1339_v15 = vld [vmem:[%s3769_s7 + $0x8] sm:$0xff]  ;;  %v1340_v16 = vld [vmem:[%s3769_s7 + $0x10] sm:$0xff]  ;;  %s2243_s17 = sld [smem:[#allocation6 + $0x4]]  ;;  %s2253_s28 = sld [smem:[#allocation6 + $0x6]]  ;;  %vm1038_vm6 = vcmask 261120  }
  0x85   : > { %s2221_s24 = sshll.u32 %s799_s23, 3  ;;  %s2327_s20 = sshll.u32 %s799_s23, 4  ;;  %v1483_v17 = vld [vmem:[%s3770_s8] sm:$0xff]  ;;  %v1341_v18 = vld [vmem:[%s3769_s7 + $0x18] sm:$0xff]  ;;  %v1484_v19 = vld [vmem:[%s3770_s8 + $0x8] sm:$0xff] }
  0x86   : > { %s2222_s18 = sshll.u32 %s799_s23, 2  ;;  %s2223_s22 = sshll.u32 %s799_s23, 1  ;;  %v1485_v20 = vld [vmem:[%s3770_s8 + $0x10] sm:$0xff]  ;;  %v1486_v21 = vld [vmem:[%s3770_s8 + $0x18] sm:$0xff]  ;;  %v2335_v22 = vld [vmem:[%s3280_s10] sm:$0xff]  }
  0x87   : > { %s806_s30 = scalar_lea.vmem %s3835_s2, %s2221_s24  ;;  %s810_s9 = scalar_lea.vmem %s3765_s3, %s2222_s18  ;;  %v2399_v23 = vld [vmem:[%s3280_s10 + $0x10] sm:$0xff]   ;;  %v2401_v24 = vld [vmem:[%s3280_s10 + $0x20] sm:$0xff]   ;;  %v2337_v29 = vunpack.c.h.bf16 %v2335_v22  ;;  %v2336_v45 = vunpack.c.l.bf16 %v2335_v22  ;;  %v2398_v58 = vld [vmem:[%s3280_s10 + $0x8] sm:$0xff]  }
  0x88   : > { %s802_s11 = scalar_lea.vmem %s3836_s16, %s2327_s20  ;;  %v1201_v3 = vld [vmem:[%s806_s30] sm:$0xff]  ;;  %s814_s20 = scalar_lea.vmem %s3766_s4, %s2223_s22  ;;  %v2403_v25 = vld [vmem:[%s3280_s10 + $0x30] sm:$0xff]   ;;  %v2345_v31 = vunpack.c.h.bf16 %v2399_v23  ;;  %v2353_v32 = vunpack.c.h.bf16 %v2401_v24  ;;  %v2344_v48 = vunpack.c.l.bf16 %v2399_v23  ;;  %v2352_v49 = vunpack.c.l.bf16 %v2401_v24 }
  0x89   : > { %v1059_v4 = vld [vmem:[%s802_s11] sm:$0xff]  ;;  %v1060_v5 = vld [vmem:[%s802_s11 + $0x8] sm:$0xff]  ;;  %2444 = vmatprep.subr.mxu1 %v1201_v3  ;;  %s853_s18 = sld [smem:[#allocation6]]  ;;  %s2228_s22 = sld [smem:[#allocation6 + $0x1]]  ;;  %v2407_v27 = vld [vmem:[%s3280_s10 + $0x50] sm:$0xff]   ;;  %v2361_v36 = vunpack.c.h.bf16 %v2403_v25  ;;  %v2360_v53 = vunpack.c.l.bf16 %v2403_v25 }
  0x8a   : > { %v2468_v6 = vpack.c.bf16 %v1060_v5, %v1059_v4  ;;  %2445 = vmatpush3.msra.mxu1 %v1201_v3  ;;  %v1342_v7 = vld [vmem:[%s810_s9] sm:$0xf]  ;;  %s2233_s9 = sld [smem:[#allocation6 + $0x2]]  ;;  %s2238_s24 = sld [smem:[#allocation6 + $0x3]]  ;;  %v2411_v33 = vld [vmem:[%s3280_s10 + $0x70] sm:$0xff]   ;;  %v3384_v39 = vstv %s2243_s17  ;;  %v2377_v40 = vunpack.c.h.bf16 %v2407_v27  ;;  %v3388_v43 = vstv %s2253_s28 }
  0x8b   : > { %2447 = vmatmul.mubr.msk.f32.vlgmr.msra.gmra.mrb[0].mxu1 %vm1202_vm0, %v1198_v2  ;;  %v1487_v9 = vld [vmem:[%s814_s20] sm:$0x3]  ;;  %2452 = vmatprep.subr.msk.mxu1 %vm1356_vm2, %v1342_v7  ;;  %s2248_s20 = sld [smem:[#allocation6 + $0x5]]  ;;  %s2258_s21 = sld [smem:[#allocation6 + $0x7]]  ;;  %v2393_v44 = vunpack.c.h.bf16 %v2411_v33  ;;  %v2376_v0 = vunpack.c.l.bf16 %v2407_v27  ;;  %v2392_v2 = vunpack.c.l.bf16 %v2411_v33  ;;  %v2341_v4 = vunpack.c.h.bf16 %v2398_v58  ;;  %v2400_v5 = vld [vmem:[%s3280_s10 + $0x18] sm:$0xff]  }
  0x8c   : > { %2469 = vmatprep.subr.bf16.mxu0 %v2468_v6  ;;  %2449 = vmatprep.mubr.msk.f32.mxu1 %vm1202_vm0, %v1199_v8  ;;  %v2405_v26 = vld [vmem:[%s3280_s10 + $0x40] sm:$0xff]   ;;  %s1008_s11 = sld [smem:[#allocation7]]  ;;  %v2412_v27 = vld [vmem:[%s3280_s10 + $0x78] sm:$0xff]   ;;  %s3448_s25 = sshll.u32 %s3276_s1, 5 }
  0x8d   : > { %2471 = vmatpush3.bf16.msra.mxu0 %v2468_v6  ;;  %2453 = vmatpush3.msk.msra.mxu1 %vm1356_vm2, %v1342_v7  ;;  %v2409_v28 = vld [vmem:[%s3280_s10 + $0x60] sm:$0xff]   ;;  %v2369_v37 = vunpack.c.h.bf16 %v2405_v26  ;;  %v2368_v57 = vunpack.c.l.bf16 %v2405_v26  ;;  %v2410_v26 = vld [vmem:[%s3280_s10 + $0x68] sm:$0xff]   ;;  %s761_s26 = scalar_lea.vmem [#allocation10], %s3448_s25  ;;  %s1657_s14 = scalar_lea.sflag [#allocation4], %s3276_s1 }
  0x8e   : > { %2460 = vmatprep.subr.msk.mxu0 %vm1501_vm3, %v1487_v9  ;;  %v2385_v41 = vunpack.c.h.bf16 %v2409_v28  ;;  %v2384_v1 = vunpack.c.l.bf16 %v2409_v28 }
  0x8f   : > { %2450 = vmatmul.mubr.msk.f32.gmra.mrb[2].mxu1 %vm1202_vm0, %v1200_v11  ;;  %v3375_v30 = vstv %s853_s18  ;;  %v3378_v34 = vstv %s2228_s22  ;;  %v932_v54 = vmul.f32 %v2369_v37, %v3384_v39  ;;  %v931_v63 = vmul.f32 %v2368_v57, %v3384_v39  ;;  %v2404_v11 = vld [vmem:[%s3280_s10 + $0x38] sm:$0xff]   ;;  %s3015_s18 = smov [#allocation10]  }
  0x90   : > { %2439 = vmatmul.mubr.msk.f32.vlgmr.msra.gmra.mrb[0].mxu0 %vm1061_vm1, %v1056_v10  ;;  %2454 = vmatprep.mubr.msk.f32.mxu1 %vm1343_vm4, %v1338_v13  ;;  %v3380_v35 = vstv %s2233_s9  ;;  %v3382_v38 = vstv %s2238_s24  ;;  %v856_v46 = vmul.f32 %v2337_v29, %v3375_v30  ;;  %v875_v50 = vmul.f32 %v2345_v31, %v3378_v34  ;;  %v2402_v10 = vld [vmem:[%s3280_s10 + $0x28] sm:$0xff]   ;;  %s2769_s22 = sshll.u32 %s3015_s18, 4  ;;  %s2770_s22 = int_to_ptr.vmem [resolvable:$false] %s2769_s22 }
  0x91   : > { %2461 = vmatpush3.msk.msra.mxu0 %vm1501_vm3, %v1487_v9  ;;  %2441 = vmatprep.mubr.msk.f32.mxu0 %vm1061_vm1, %v1057_v12  ;;  %v3386_v42 = vstv %s2248_s20  ;;  %v3391_v47 = vstv %s2258_s21  ;;  %v894_v51 = vmul.f32 %v2353_v32, %v3380_v35  ;;  %v913_v52 = vmul.f32 %v2361_v36, %v3382_v38  ;;  %v2406_v12 = vld [vmem:[%s3280_s10 + $0x48] sm:$0xff]   ;;  %s2771_s9 = scalar_lea.vmem %s2770_s22, 1024 }
  0x92   : > { %v951_v55 = vmul.f32 %v2377_v40, %v3386_v42  ;;  %v970_v56 = vmul.f32 %v2385_v41, %v3388_v43  ;;  %v989_v59 = vmul.f32 %v2393_v44, %v3391_v47  ;;  %v855_v60 = vmul.f32 %v2336_v45, %v3375_v30 }
  0x93   : > { %2455 = vmatmul.mubr.msk.f32.vlgmr.msra.gmra.mrb[4].mxu1 %vm1343_vm4, %v1339_v15  ;;  %v874_v61 = vmul.f32 %v2344_v48, %v3378_v34  ;;  %v893_v62 = vmul.f32 %v2352_v49, %v3380_v35  ;;  %v912_v3 = vmul.f32 %v2360_v53, %v3382_v38  ;;  %v936_v6 = vadd.f32 %v932_v54, %v856_v46 }
  0x94   : > { %2442 = vmatmul.mubr.msk.f32.gmra.mrb[2].mxu0 %vm1061_vm1, %v1058_v14  ;;  %2457 = vmatprep.mubr.msk.f32.mxu1 %vm1343_vm4, %v1340_v16  ;;  %v950_v7 = vmul.f32 %v2376_v0, %v3386_v42  ;;  %v969_v8 = vmul.f32 %v2384_v1, %v3388_v43  ;;  %v988_v9 = vmul.f32 %v2392_v2, %v3391_v47  ;;  %v2357_v23 = vunpack.c.h.bf16 %v2402_v10 }
  0x95   : > { %2462 = vmatprep.mubr.msk.f32.mxu0 %vm1488_vm5, %v1483_v17  ;;  %v955_v13 = vadd.f32 %v951_v55, %v875_v50  ;;  %v974_v14 = vadd.f32 %v970_v56, %v894_v51  ;;  %v993_v15 = vadd.f32 %v989_v59, %v913_v52  ;;  %v935_v16 = vadd.f32 %v931_v63, %v855_v60  ;;  %v2408_v17 = vld [vmem:[%s3280_s10 + $0x58] sm:$0xff]   ;;  %s3445_s10 = sshll.u32 %s2999_s27, 9  ;;  %s1697_s27 = sshll.u32 %s761_s26, 4  ;;  %s3461_s27 = int_to_ptr.vmem [resolvable:$true] %s1697_s27 }
  0x96   : > { %v992_v22 = vadd.f32 %v988_v9, %v912_v3  ;;  %v2365_v24 = vunpack.c.h.bf16 %v2404_v11  ;;  %v2373_v25 = vunpack.c.h.bf16 %v2406_v12  ;;  %v2381_v29 = vunpack.c.h.bf16 %v2408_v17  ;;  %s3459_s15 = scalar_lea.hbm %s3774_s12, %s3445_s10  ;;  %s2765_s16 = scalar_lea.vmem %s3461_s27, 512 }
  0x97   : > { %2458 = vmatmul.mubr.msk.f32.gmra.mrb[6].mxu1 %vm1343_vm4, %v1341_v18  ;;  %v954_v18 = vadd.f32 %v950_v7, %v874_v61  ;;  %v997_v31 = vadd.f32 %v955_v13, %v936_v6  ;;  %v1001_v32 = vadd.f32 %v993_v15, %v974_v14  ;;  %v896_v33 = vmul.f32 %v2357_v23, %v3380_v35  ;;  %p2766_p3 = scmp.ne.s32.totalorder %s3461_s27, %s2765_s16  ;;  %p2772_p6 = scmp.lt.s32.totalorder %s3461_s27, %s2770_s22 }
  0x98   : > { %2463 = vmatmul.mubr.msk.f32.vlgmr.msra.gmra.mrb[4].mxu0 %vm1488_vm5, %v1484_v19  ;;  %v973_v19 = vadd.f32 %v969_v8, %v893_v62  ;;  %v934_v36 = vmul.f32 %v2373_v25, %v3384_v39  ;;  %v915_v37 = vmul.f32 %v2365_v24, %v3382_v38  ;;  %v953_v40 = vmul.f32 %v2381_v29, %v3386_v42  ;;  %p2773_p8 = scmp.lt.s32.totalorder %s2771_s9, %s2765_s16 }
  0x99   : > { %2465 = vmatprep.mubr.msk.f32.mxu0 %vm1488_vm5, %v1485_v20  ;;  %v858_v20 = vmul.f32 %v2341_v4, %v3375_v30  ;;  %v2389_v41 = vunpack.c.h.bf16 %v2410_v26  ;;  %v2397_v44 = vunpack.c.h.bf16 %v2412_v27  ;;  %v996_v45 = vadd.f32 %v954_v18, %v935_v16  ;;  %p2767_p1 = pnand %p2766_p3, %p3218_p12 }
  0x9a   : > { %v1000_v46 = vadd.f32 %v992_v22, %v973_v19  ;;  %v2340_v49 = vunpack.c.l.bf16 %v2398_v58  ;;  %v1009_v53 = vstv %s1008_s11  ;;  %v2348_v54 = vunpack.c.l.bf16 %v2400_v5  ;;  %p2774_p13 = por %p2773_p8, %p2772_p6 }
  0x9b   : > { %v938_v48 = vadd.f32 %v934_v36, %v858_v20  ;;  %v972_v51 = vmul.f32 %v2389_v41, %v3388_v43  ;;  %v991_v52 = vmul.f32 %v2397_v44, %v3391_v47  ;;  %v2356_v55 = vunpack.c.l.bf16 %v2402_v10  ;;  %p2768_p5 = pneg %p2767_p1 }
  0x9c   : > { %2466 = vmatmul.mubr.msk.f32.gmra.mrb[6].mxu0 %vm1488_vm5, %v1486_v21  ;;  %v2349_v21 = vunpack.c.h.bf16 %v2400_v5  ;;  %v2364_v56 = vunpack.c.l.bf16 %v2404_v11  ;;  %v1005_v57 = vadd.f32 %v1001_v32, %v997_v31  ;;  %v1004_v62 = vadd.f32 %v1000_v46, %v996_v45 }
  0x9d   : > { %v976_v59 = vadd.f32 %v972_v51, %v896_v33  ;;  %v995_v60 = vadd.f32 %v991_v52, %v915_v37  ;;  %v857_v63 = vmul.f32 %v2340_v49, %v3375_v30  ;;  %v876_v0 = vmul.f32 %v2348_v54, %v3378_v34  ;;  %p2775_p2 = pnand %p2774_p13, %p2768_p5 }
  0x9e   : > { %v877_v28 = vmul.f32 %v2349_v21, %v3378_v34  ;;  %v2372_v1 = vunpack.c.l.bf16 %v2406_v12  ;;  %v895_v2 = vmul.f32 %v2356_v55, %v3380_v35  ;;  %v2380_v3 = vunpack.c.l.bf16 %v2408_v17 }
  0x9f   : > { %v1003_v58 = vadd.f32 %v995_v60, %v976_v59  ;;  %v2388_v4 = vunpack.c.l.bf16 %v2410_v26  ;;  %v914_v6 = vmul.f32 %v2364_v56, %v3382_v38  ;;  %v2396_v7 = vunpack.c.l.bf16 %v2412_v27 }
  0xa0   : > { %v957_v50 = vadd.f32 %v953_v40, %v877_v28  ;;  %v933_v5 = vmul.f32 %v2372_v1, %v3384_v39  ;;  %v952_v9 = vmul.f32 %v2380_v3, %v3386_v42  ;;  %v3431_v11 = vadd.f32 %v1009_v53, %v1005_v57 }
  0xa1   : > { %v971_v10 = vmul.f32 %v2388_v4, %v3388_v43  ;;  %v990_v34 = vmul.f32 %v2396_v7, %v3391_v47  ;;  %v3434_v12 = vadd.f32 %v1009_v53, %v1004_v62 }
  0xa2   : > { %v999_v61 = vadd.f32 %v957_v50, %v938_v48  ;;  %v937_v30 = vadd.f32 %v933_v5, %v857_v63  ;;  %v956_v35 = vadd.f32 %v952_v9, %v876_v0  ;;  %v2260_v14 = vmul.f32 -1.442695, %v3431_v11 }
  0xa3   : > { %v975_v13 = vadd.f32 %v971_v10, %v895_v2  ;;  %v994_v38 = vadd.f32 %v990_v34, %v914_v6  ;;  %v2259_v39 = vmul.f32 -1.442695, %v3434_v12 }
  0xa4   : > { %v1007_v8 = vadd.f32 %v1003_v58, %v999_v61  ;;  %v998_v16 = vadd.f32 %v956_v35, %v937_v30  ;;  %2594 = vpow2.f32 %v2260_v14 }
  0xa5   : > { %v1002_v42 = vadd.f32 %v994_v38, %v975_v13  ;;  %2596 = vpow2.f32 %v2259_v39 }
  0xa6   : > { %v3438_v15 = vadd.f32 %v1009_v53, %v1007_v8 }
  0xa7   : > { %v1006_v17 = vadd.f32 %v1002_v42, %v998_v16 }
  0xa8   : > { %v2262_v43 = vmul.f32 -1.442695, %v3438_v15 }
  0xa9   : > { %v3441_v47 = vadd.f32 %v1009_v53, %v1006_v17 }
  0xaa   : > { %2598 = vpow2.f32 %v2262_v43 }
  0xab   : > { %v2261_v18 = vmul.f32 -1.442695, %v3441_v47 }
  0xad   : > { %2600 = vpow2.f32 %v2261_v18 }
  0xae   : > { %v2595_v19 = vpop.eup %2594 }
  0xaf   : > { %v2597_v20 = vpop.eup %2596  ;;  %v1027_v22 = vadd.f32 1.0, %v2595_v19 }
  0xb0   : > { %v1026_v23 = vadd.f32 1.0, %v2597_v20 }
  0xb1   : > { %2602 = vrcp.f32 %v1027_v22 }
  0xb2   : > { %2604 = vrcp.f32 %v1026_v23 }
  0xb4   : > { %v2599_v21 = vpop.eup %2598 }
  0xb5   : > { %v1029_v24 = vadd.f32 1.0, %v2599_v21 }
  0xb7   : > { %v2601_v25 = vpop.eup %2600  ;;  %2606 = vrcp.f32 %v1029_v24 }
  0xb8   : > { %v1028_v26 = vadd.f32 1.0, %v2601_v25 }
  0xba   : > { %2608 = vrcp.f32 %v1028_v26 }
  0xbb   : > { %v2603_v27 = vpop.eup %2602 }
  0xbc   : > { %v2605_v28 = vpop.eup %2604  ;;  %1040 = vst.msk [vmem:[%s761_s26 + $0x8] sm:$0xff] %vm1038_vm6, %v2603_v27 }
  0xbd   : > { %1039 = vst.msk [vmem:[%s761_s26] sm:$0xff] %vm1038_vm6, %v2605_v28 }
  0xc1   : > { %v2607_v29 = vpop.eup %2606 }
  0xc2   : > { %1042 = vst.msk [vmem:[%s761_s26 + $0x18] sm:$0xff] %vm1038_vm6, %v2607_v29 }
  0xc4   : > { %v2609_v31 = vpop.eup %2608 }
  0xc5   : > { %1041 = vst.msk [vmem:[%s761_s26 + $0x10] sm:$0xff] %vm1038_vm6, %v2609_v31 }
  0xc6   : > { %2778 = shalt.err (!%p2775_p2)
}
  0xc7   : > { %s2779_s24 = scalar_lea.hbm %s3459_s15, 512  ;;  %s2783_s28 = scalar_lea.hbm %s3774_s12, 1024 }
  0xc8   : > { %p2780_p4 = scmp.ne.s32.totalorder %s3459_s15, %s2779_s24  ;;  %p2784_p10 = scmp.lt.u32.totalorder %s3459_s15, %s3774_s12 }
  0xc9   : > { %p2785_p0 = scmp.lt.u32.totalorder %s2783_s28, %s2779_s24  ;;  %p2787_p3 = scmp.lt.u32.totalorder %s2779_s24, %s3459_s15 }
  0xca   : > { %p2781_p11 = pnand %p2780_p4, %p3218_p12 }
  0xcb   : > { %p2786_p9 = por %p2785_p0, %p2784_p10 }
  0xcc   : > { %p2782_p7 = pneg %p2781_p11 }
  0xcd   : > { %p2788_p1 = por %p2787_p3, %p2786_p9 }
  0xcf   : > { %p2789_p5 = pnand %p2788_p1, %p2782_p7 }
  0xd1   : > { %2792 = shalt.err (!%p2789_p5)
}
  0xd2   : > { %s3797_s26 = smov 128   ;;  %s3799_s23 = smov 8  }
  0xd3   : > { %2486 = dma.vmem_to_hbm [thread:$0]  (%p3218_p12), %s3461_s27, 512, %s3459_s15, %s1657_s14, %s3797_s26, %s3797_s26, %s3799_s23  }
  0xd4   : > { %s1043_s30 = sld [smem:[#allocation9]]  ;;  %s2263_s16 = sld [smem:[#allocation7 + $0x1]] }
  0xd5   : > { %s2272_s18 = sld [smem:[#allocation9 + $0x1]]  ;;  %s2281_s22 = sld [smem:[#allocation9 + $0x2]] }
  0xd6   : > { %s2291_s9 = sld [smem:[#allocation9 + $0x3]]  ;;  %s2301_s24 = sld [smem:[#allocation9 + $0x4]] }
  0xd7   : > { %s3507_s15 = scalar_lea.vmem [#allocation13], %s3448_s25  ;;  %s768_s27 = scalar_lea.vmem [#allocation11], %s3448_s25 }
  0xd8   : > { %s3796_s14 = sand.u32 1, %s3144_s0   ;;  %s1715_s17 = sshll.u32 %s768_s27, 4  ;;  %s3529_s17 = int_to_ptr.vmem [resolvable:$true] %s1715_s17 }
  0xd9   : > { %s1733_s20 = sshll.u32 %s3507_s15, 4  ;;  %s3527_s11 = scalar_lea.hbm %s3775_s13, %s3445_s10  ;;  %s3542_s20 = int_to_ptr.vmem [resolvable:$true] %s1733_s20 }
  0xda   : > { %v1044_v32 = vstv %s1043_s30  ;;  %v1050_v37 = vstv %s2263_s16  ;;  %s3532_s30 = scalar_lea.vmem [#allocation14], %s3448_s25  ;;  %s2793_s28 = scalar_lea.vmem %s3529_s17, 512 }
  0xdb   : > { %v1046_v33 = vmul.f32 %v1044_v32, %v3431_v11  ;;  %v1045_v40 = vmul.f32 %v1044_v32, %v3434_v12  ;;  %v1048_v45 = vmul.f32 %v1044_v32, %v3438_v15  ;;  %v1188_v48 = vstv %s2272_s18  ;;  %p2794_p6 = scmp.ne.s32.totalorder %s3529_s17, %s2793_s28  ;;  %s3018_s21 = smov [#allocation11]  }
  0xdc   : > { %v1047_v49 = vmul.f32 %v1044_v32, %v3441_v47  ;;  %v1329_v50 = vstv %s2281_s22  ;;  %v3494_v55 = vstv %s2291_s9  ;;  %v3496_v56 = vstv %s2301_s24  ;;  %s3837_s22 = sld [smem:[#allocation39_spill]]  ;;  %s2797_s16 = sshll.u32 %s3018_s21, 4  ;;  %s2798_s16 = int_to_ptr.vmem [resolvable:$false] %s2797_s16 }
  0xdd   : > { %v1052_v51 = vadd.f32 %v1050_v37, %v1046_v33  ;;  %v1051_v53 = vadd.f32 %v1050_v37, %v1045_v40  ;;  %v1054_v63 = vadd.f32 %v1050_v37, %v1048_v45  ;;  %p2795_p8 = pnand %p2794_p6, %p3218_p12  ;;  %s2799_s18 = scalar_lea.vmem %s2798_s16, 1024 }
  0xde   : > { %v1053_v2 = vadd.f32 %v1050_v37, %v1047_v49  ;;  %p2800_p2 = scmp.lt.s32.totalorder %s3529_s17, %s2798_s16  ;;  %p2801_p4 = scmp.lt.s32.totalorder %s2799_s18, %s2793_s28 }
  0xdf   : > { %p2796_p13 = pneg %p2795_p8 }
  0xe0   : > { %p2802_p11 = por %p2801_p4, %p2800_p2 }
  0xe2   : > { %s3540_s9 = scalar_lea.hbm %s3837_s22, %s3445_s10  ;;  %p2803_p7 = pnand %p2802_p11, %p2796_p13 }
 0x15e   : > { %v2448_v36 = vpop.f32.mrb[0].mxu1 }
 0x15f   : > { %v2278_v41 = vmul.f32 -1.442695, %v2448_v36  ;;  %v1281_v44 = vpop.f32.mrb[1].mxu1  ;;  %v1331_v3 = vmul.f32 %v2448_v36, %v1329_v50 }
 0x160   : > { %v2277_v46 = vmul.f32 -1.442695, %v1281_v44  ;;  %v1330_v4 = vmul.f32 %v1329_v50, %v1281_v44 }
 0x161   : > { %2610 = vpow2.f32 %v2278_v41 }
 0x162   : > { %2612 = vpow2.f32 %v2277_v46  ;;  %v2451_v54 = vpop.f32.mrb[2].mxu1 }
 0x163   : > { %v2440_v52 = vpop.f32.mrb[0].mxu0  ;;  %v2280_v61 = vmul.f32 -1.442695, %v2451_v54  ;;  %v1291_v62 = vpop.f32.mrb[3].mxu1  ;;  %v1333_v7 = vmul.f32 %v2451_v54, %v1329_v50 }
 0x164   : > { %v2269_v57 = vmul.f32 -1.442695, %v2440_v52  ;;  %v1190_v59 = vmul.f32 %v2440_v52, %v1188_v48  ;;  %v1140_v60 = vpop.f32.mrb[1].mxu0  ;;  %v2279_v58 = vmul.f32 -1.442695, %v1291_v62  ;;  %v1332_v8 = vmul.f32 %v1329_v50, %v1291_v62 }
 0x165   : > { %v2268_v0 = vmul.f32 -1.442695, %v1140_v60  ;;  %v1189_v1 = vmul.f32 %v1188_v48, %v1140_v60 }
 0x166   : > { %2614 = vpow2.f32 %v2269_v57  ;;  %v1194_v6 = vadd.f32 %v1190_v59, %v1052_v51  ;;  %v2456_v10 = vpop.f32.mrb[4].mxu1 }
 0x167   : > { %2616 = vpow2.f32 %v2268_v0  ;;  %v1193_v5 = vadd.f32 %v1189_v1, %v1051_v53  ;;  %v2443_v9 = vpop.f32.mrb[2].mxu0  ;;  %v1426_v35 = vpop.f32.mrb[5].mxu1  ;;  %v2288_v13 = vmul.f32 -1.442695, %v2456_v10  ;;  %v1476_v14 = vmul.f32 %v2456_v10, %v3494_v55 }
 0x168   : > { %2618 = vpow2.f32 %v2280_v61  ;;  %v2271_v11 = vmul.f32 -1.442695, %v2443_v9  ;;  %v1192_v30 = vmul.f32 %v2443_v9, %v1188_v48  ;;  %v1335_v34 = vadd.f32 %v1331_v3, %v1194_v6  ;;  %v1150_v12 = vpop.f32.mrb[3].mxu0 }
 0x169   : > { %2620 = vpow2.f32 %v2279_v58  ;;  %v2270_v38 = vmul.f32 -1.442695, %v1150_v12  ;;  %v1191_v15 = vmul.f32 %v1188_v48, %v1150_v12  ;;  %v1334_v16 = vadd.f32 %v1330_v4, %v1193_v5 }
 0x16a   : > { %2622 = vpow2.f32 %v2271_v11  ;;  %v1196_v39 = vadd.f32 %v1192_v30, %v1054_v63  ;;  %v1480_v42 = vadd.f32 %v1476_v14, %v1335_v34  ;;  %v2287_v43 = vmul.f32 -1.442695, %v1426_v35  ;;  %v2459_v47 = vpop.f32.mrb[6].mxu1 }
 0x16b   : > { %2624 = vpow2.f32 %v2288_v13  ;;  %v1475_v17 = vmul.f32 %v3494_v55, %v1426_v35  ;;  %v2464_v18 = vpop.f32.mrb[4].mxu0  ;;  %v2611_v19 = vpop.eup %2610  ;;  %v1195_v20 = vadd.f32 %v1191_v15, %v1053_v2  ;;  %v2290_v22 = vmul.f32 -1.442695, %v2459_v47 }
 0x16c   : > { %2626 = vpow2.f32 %v2270_v38  ;;  %v1337_v21 = vadd.f32 %v1333_v7, %v1196_v39  ;;  %v1436_v23 = vpop.f32.mrb[7].mxu1  ;;  %v1571_v24 = vpop.f32.mrb[5].mxu0  ;;  %v1313_v26 = vadd.f32 1.0, %v2611_v19  ;;  %v1478_v28 = vmul.f32 %v2459_v47, %v3494_v55 }
 0x16d   : > { %v2613_v25 = vpop.eup %2612  ;;  %2628 = vpow2.f32 %v2287_v43  ;;  %v1479_v27 = vadd.f32 %v1475_v17, %v1334_v16  ;;  %v2298_v31 = vmul.f32 -1.442695, %v2464_v18  ;;  %v1621_v32 = vmul.f32 %v2464_v18, %v3496_v56 }
 0x16e   : > { %v1312_v29 = vadd.f32 1.0, %v2613_v25  ;;  %2630 = vpow2.f32 %v2290_v22  ;;  %v1482_v33 = vadd.f32 %v1478_v28, %v1337_v21  ;;  %v1336_v36 = vadd.f32 %v1332_v8, %v1195_v20 }
 0x16f   : > { %2632 = vrcp.f32 %v1313_v26  ;;  %v2289_v37 = vmul.f32 -1.442695, %v1436_v23  ;;  %v2467_v40 = vpop.f32.mrb[6].mxu0  ;;  %v1625_v44 = vadd.f32 %v1621_v32, %v1480_v42  ;;  %v1477_v45 = vmul.f32 %v3494_v55, %v1436_v23 }
 0x170   : > { %v2615_v41 = vpop.eup %2614  ;;  %2634 = vrcp.f32 %v1312_v29  ;;  %v1581_v46 = vpop.f32.mrb[7].mxu0  ;;  %v1620_v50 = vmul.f32 %v3496_v56, %v1571_v24  ;;  %v1623_v60 = vmul.f32 %v2467_v40, %v3496_v56  ;;  %v2300_v38 = vmul.f32 -1.442695, %v2467_v40 }
 0x171   : > { %v2617_v48 = vpop.eup %2616  ;;  %v1172_v49 = vadd.f32 1.0, %v2615_v41  ;;  %2636 = vpow2.f32 %v2298_v31  ;;  %v1481_v53 = vadd.f32 %v1477_v45, %v1336_v36  ;;  %v1622_v55 = vmul.f32 %v3496_v56, %v1581_v46 }
 0x172   : > { %v2619_v51 = vpop.eup %2618  ;;  %v1171_v52 = vadd.f32 1.0, %v2617_v48  ;;  %2638 = vpow2.f32 %v2289_v37  ;;  %v1624_v59 = vadd.f32 %v1620_v50, %v1479_v27  ;;  %v1627_v1 = vadd.f32 %v1623_v60, %v1482_v33 }
 0x173   : > { %v2621_v54 = vpop.eup %2620  ;;  %2640 = vrcp.f32 %v1172_v49  ;;  %v1315_v57 = vadd.f32 1.0, %v2619_v51  ;;  %v1626_v3 = vadd.f32 %v1622_v55, %v1481_v53  ;;  %v2303_v8 = vmul.f32 -1.442695, %v1625_v44 }
 0x174   : > { %v2623_v61 = vpop.eup %2622  ;;  %2642 = vrcp.f32 %v1171_v52  ;;  %v1314_v62 = vadd.f32 1.0, %v2621_v54  ;;  %v2297_v56 = vmul.f32 -1.442695, %v1571_v24  ;;  %v2302_v35 = vmul.f32 -1.442695, %v1624_v59 }
 0x175   : > { %v2625_v63 = vpop.eup %2624  ;;  %2644 = vrcp.f32 %v1315_v57  ;;  %v1174_v0 = vadd.f32 1.0, %v2623_v61  ;;  %v2305_v15 = vmul.f32 -1.442695, %v1627_v1  ;;  %v2299_v42 = vmul.f32 -1.442695, %v1581_v46 }
 0x176   : > { %v2627_v58 = vpop.eup %2626  ;;  %2646 = vrcp.f32 %v1314_v62  ;;  %v1458_v2 = vadd.f32 1.0, %v2625_v63  ;;  %v2304_v17 = vmul.f32 -1.442695, %v1626_v3 }
 0x177   : > { %v2629_v4 = vpop.eup %2628  ;;  %2648 = vrcp.f32 %v1174_v0  ;;  %v1173_v6 = vadd.f32 1.0, %v2627_v58 }
 0x178   : > { %v2631_v5 = vpop.eup %2630  ;;  %2650 = vrcp.f32 %v1458_v2  ;;  %v1457_v7 = vadd.f32 1.0, %v2629_v4 }
 0x179   : > { %v2633_v9 = vpop.eup %2632  ;;  %2652 = vrcp.f32 %v1173_v6  ;;  %v1460_v10 = vadd.f32 1.0, %v2631_v5 }
 0x17a   : > { %v2635_v11 = vpop.eup %2634  ;;  %2654 = vrcp.f32 %v1457_v7  ;;  %1325 = vst.msk [vmem:[%s3507_s15 + $0x8] sm:$0xff] %vm1038_vm6, %v2633_v9 }
 0x17b   : > { %v2637_v30 = vpop.eup %2636  ;;  %2656 = vrcp.f32 %v1460_v10  ;;  %1324 = vst.msk [vmem:[%s3507_s15] sm:$0xff] %vm1038_vm6, %v2635_v11 }
 0x17c   : > { %v2639_v34 = vpop.eup %2638  ;;  %v1603_v12 = vadd.f32 1.0, %v2637_v30  ;;  %2658 = vpow2.f32 %v2303_v8 }
 0x17d   : > { %v2641_v13 = vpop.eup %2640  ;;  %v1459_v14 = vadd.f32 1.0, %v2639_v34  ;;  %2660 = vpow2.f32 %v2297_v56 }
 0x17e   : > { %v2643_v39 = vpop.eup %2642  ;;  %2662 = vrcp.f32 %v1603_v12  ;;  %1184 = vst.msk [vmem:[%s768_s27 + $0x8] sm:$0xff] %vm1038_vm6, %v2641_v13 }
 0x17f   : > { %v2645_v16 = vpop.eup %2644  ;;  %2664 = vrcp.f32 %v1459_v14  ;;  %1183 = vst.msk [vmem:[%s768_s27] sm:$0xff] %vm1038_vm6, %v2643_v39 }
 0x180   : > { %v2647_v43 = vpop.eup %2646  ;;  %2666 = vpow2.f32 %v2302_v35  ;;  %1327 = vst.msk [vmem:[%s3507_s15 + $0x18] sm:$0xff] %vm1038_vm6, %v2645_v16 }
 0x181   : > { %v2649_v47 = vpop.eup %2648  ;;  %2668 = vpow2.f32 %v2300_v38  ;;  %1326 = vst.msk [vmem:[%s3507_s15 + $0x10] sm:$0xff] %vm1038_vm6, %v2647_v43  ;;  %s3548_s15 = scalar_lea.sflag [#allocation12], %s3796_s14 }
 0x182   : > { %v2651_v18 = vpop.eup %2650  ;;  %2670 = vpow2.f32 %v2305_v15  ;;  %1186 = vst.msk [vmem:[%s768_s27 + $0x18] sm:$0xff] %vm1038_vm6, %v2649_v47 }
 0x183   : > { %v2653_v19 = vpop.eup %2652  ;;  %2672 = vpow2.f32 %v2299_v42  ;;  %1470 = vst.msk [vmem:[%s3532_s30 + $0x8] sm:$0xff] %vm1038_vm6, %v2651_v18 }
 0x184   : > { %v2655_v20 = vpop.eup %2654  ;;  %2674 = vpow2.f32 %v2304_v17  ;;  %1185 = vst.msk [vmem:[%s768_s27 + $0x10] sm:$0xff] %vm1038_vm6, %v2653_v19 }
 0x185   : > { %v2657_v21 = vpop.eup %2656 }
 0x186   : > { %2806 = shalt.err (!%p2803_p7)
}
 0x187   : > { %s2807_s27 = scalar_lea.hbm %s3527_s11, 512  ;;  %s2811_s21 = scalar_lea.hbm %s3775_s13, 1024 }
 0x188   : > { %p2808_p10 = scmp.ne.s32.totalorder %s3527_s11, %s2807_s27  ;;  %p2812_p3 = scmp.lt.u32.totalorder %s3527_s11, %s3775_s13 }
 0x189   : > { %p2813_p1 = scmp.lt.u32.totalorder %s2811_s21, %s2807_s27  ;;  %p2815_p6 = scmp.lt.u32.totalorder %s2807_s27, %s3527_s11 }
 0x18a   : > { %p2809_p0 = pnand %p2808_p10, %p3218_p12 }
 0x18b   : > { %p2814_p5 = por %p2813_p1, %p2812_p3 }
 0x18c   : > { %p2810_p9 = pneg %p2809_p0 }
 0x18d   : > { %p2816_p8 = por %p2815_p6, %p2814_p5 }
 0x18f   : > { %p2817_p13 = pnand %p2816_p8, %p2810_p9 }
 0x191   : > { %2820 = shalt.err (!%p2817_p13)
}
 0x192   : > { %s3838_s28 = smov 128   ;;  %1469 = vst.msk [vmem:[%s3532_s30] sm:$0xff] %vm1038_vm6, %v2655_v20  ;;  %v2659_v22 = vpop.eup %2658  ;;  %1472 = vst.msk [vmem:[%s3532_s30 + $0x18] sm:$0xff] %vm1038_vm6, %v2657_v21  ;;  %s2821_s26 = scalar_lea.vmem %s3542_s20, 512 }
 0x193   : > { %2487 = dma.vmem_to_hbm [thread:$0]  (%p3218_p12), %s3529_s17, 512, %s3527_s11, %s3548_s15, %s3838_s28, %s3838_s28, %s3799_s23  }
 0x194   : > { %p2822_p2 = scmp.ne.s32.totalorder %s3542_s20, %s2821_s26  ;;  %s3019_s14 = smov [#allocation13]  }
 0x195   : > { %s2825_s24 = sshll.u32 %s3019_s14, 4  ;;  %s2826_s24 = int_to_ptr.vmem [resolvable:$false] %s2825_s24 }
 0x196   : > { %p2823_p4 = pnand %p2822_p2, %p3218_p12  ;;  %s2827_s18 = scalar_lea.vmem %s2826_s24, 1024 }
 0x197   : > { %p2828_p7 = scmp.lt.s32.totalorder %s3542_s20, %s2826_s24  ;;  %p2829_p10 = scmp.lt.s32.totalorder %s2827_s18, %s2821_s26 }
 0x198   : > { %p2824_p11 = pneg %p2823_p4 }
 0x199   : > { %p2830_p0 = por %p2829_p10, %p2828_p7 }
 0x19b   : > { %p2831_p9 = pnand %p2830_p0, %p2824_p11 }
 0x19d   : > { %2834 = shalt.err (!%p2831_p9)
}
 0x19e   : > { %s2835_s17 = scalar_lea.hbm %s3540_s9, 512  ;;  %s2839_s21 = scalar_lea.hbm %s3837_s22, 1024 }
 0x19f   : > { %p2836_p3 = scmp.ne.s32.totalorder %s3540_s9, %s2835_s17  ;;  %p2840_p6 = scmp.lt.u32.totalorder %s3540_s9, %s3837_s22 }
 0x1a0   : > { %p2841_p8 = scmp.lt.u32.totalorder %s2839_s21, %s2835_s17  ;;  %p2843_p2 = scmp.lt.u32.totalorder %s2835_s17, %s3540_s9 }
 0x1a1   : > { %p2837_p1 = pnand %p2836_p3, %p3218_p12 }
 0x1a2   : > { %p2842_p13 = por %p2841_p8, %p2840_p6 }
 0x1a3   : > { %p2838_p5 = pneg %p2837_p1 }
 0x1a4   : > { %p2844_p4 = por %p2843_p2, %p2842_p13 }
 0x1a6   : > { %p2845_p11 = pnand %p2844_p4, %p2838_p5 }
 0x1a8   : > { %2848 = shalt.err (!%p2845_p11)
}
 0x1a9   : > { %2488 = dma.vmem_to_hbm [thread:$0]  (%p3218_p12), %s3542_s20, 512, %s3540_s9, %s3548_s15, %s3838_s28, %s3838_s28, %s3799_s23   ;;  %v2661_v23 = vpop.eup %2660  ;;  %v1641_v24 = vadd.f32 1.0, %v2659_v22 }
 0x1aa   : > { %v2663_v25 = vpop.eup %2662  ;;  %v1602_v26 = vadd.f32 1.0, %v2661_v23  ;;  %s3839_s18 = sld [smem:[#allocation40_spill]]  ;;  %s3840_s11 = sshll.u32 %s3532_s30, 4  ;;  %s3612_s11 = int_to_ptr.vmem [resolvable:$true] %s3840_s11 }
 0x1ab   : > { %v2665_v27 = vpop.eup %2664  ;;  %2676 = vrcp.f32 %v1641_v24  ;;  %s3615_s27 = scalar_lea.vmem [#allocation16], %s3448_s25  ;;  %s3841_s20 = sand.u32 1, %s3144_s0  }
 0x1ac   : > { %1615 = vst.msk [vmem:[%s3615_s27 + $0x8] sm:$0xff] %vm1038_vm6, %v2663_v25  ;;  %v2667_v28 = vpop.eup %2666  ;;  %2678 = vrcp.f32 %v1602_v26  ;;  %1471 = vst.msk [vmem:[%s3532_s30 + $0x10] sm:$0xff] %vm1038_vm6, %v2665_v27  ;;  %s3623_s9 = scalar_lea.sflag [#allocation15], %s3841_s20  ;;  %s2849_s15 = scalar_lea.vmem %s3612_s11, 512 }
 0x1ad   : > { %v2669_v29 = vpop.eup %2668  ;;  %v1640_v31 = vadd.f32 1.0, %v2667_v28  ;;  %p2850_p7 = scmp.ne.s32.totalorder %s3612_s11, %s2849_s15  ;;  %s3020_s21 = smov [#allocation14]  }
 0x1ae   : > { %s2853_s16 = sshll.u32 %s3020_s21, 4  ;;  %s2854_s16 = int_to_ptr.vmem [resolvable:$false] %s2853_s16 }
 0x1af   : > { %p2851_p10 = pnand %p2850_p7, %p3218_p12  ;;  %s2855_s14 = scalar_lea.vmem %s2854_s16, 1024 }
 0x1b0   : > { %s3608_s17 = scalar_lea.hbm %s3839_s18, %s3445_s10  ;;  %p2856_p9 = scmp.lt.s32.totalorder %s3612_s11, %s2854_s16 }
 0x1b1   : > { %p2852_p0 = pneg %p2851_p10  ;;  %p2857_p3 = scmp.lt.s32.totalorder %s2855_s14, %s2849_s15 }
 0x1b3   : > { %p2858_p1 = por %p2857_p3, %p2856_p9 }
 0x1b5   : > { %p2859_p5 = pnand %p2858_p1, %p2852_p0 }
 0x1b7   : > { %2862 = shalt.err (!%p2859_p5)
}
 0x1b8   : > { %s2863_s0 = scalar_lea.hbm %s3608_s17, 512  ;;  %s2867_s24 = scalar_lea.hbm %s3839_s18, 1024 }
 0x1b9   : > { %p2864_p6 = scmp.ne.s32.totalorder %s3608_s17, %s2863_s0  ;;  %p2868_p2 = scmp.lt.u32.totalorder %s3608_s17, %s3839_s18 }
 0x1ba   : > { %p2869_p4 = scmp.lt.u32.totalorder %s2867_s24, %s2863_s0  ;;  %p2871_p7 = scmp.lt.u32.totalorder %s2863_s0, %s3608_s17 }
 0x1bb   : > { %p2865_p8 = pnand %p2864_p6, %p3218_p12 }
 0x1bc   : > { %p2870_p11 = por %p2869_p4, %p2868_p2 }
 0x1bd   : > { %p2866_p13 = pneg %p2865_p8 }
 0x1be   : > { %p2872_p10 = por %p2871_p7, %p2870_p11 }
 0x1c0   : > { %p2873_p0 = pnand %p2872_p10, %p2866_p13 }
 0x1c2   : > { %2876 = shalt.err (!%p2873_p0)
}
 0x1c3   : > { %2489 = dma.vmem_to_hbm [thread:$0]  (%p3218_p12), %s3612_s11, 512, %s3608_s17, %s3623_s9, %s3838_s28, %s3838_s28, %s3799_s23   ;;  %v2671_v32 = vpop.eup %2670  ;;  %v1605_v33 = vadd.f32 1.0, %v2669_v29  ;;  %2680 = vrcp.f32 %v1640_v31 }
 0x1c4   : > { %v2673_v36 = vpop.eup %2672  ;;  %v1643_v37 = vadd.f32 1.0, %v2671_v32  ;;  %s3651_s17 = scalar_lea.vmem [#allocation17], %s3448_s25  ;;  %s1769_s11 = sshll.u32 %s3615_s27, 4  ;;  %s3669_s11 = int_to_ptr.vmem [resolvable:$true] %s1769_s11 }
 0x1c5   : > { %v2675_v40 = vpop.eup %2674  ;;  %2682 = vrcp.f32 %v1605_v33  ;;  %v1604_v41 = vadd.f32 1.0, %v2673_v36  ;;  %s1787_s15 = sshll.u32 %s3651_s17, 4  ;;  %s3842_s0 = sld [smem:[#allocation41_spill]]  ;;  %s3679_s15 = int_to_ptr.vmem [resolvable:$true] %s1787_s15 }
 0x1c6   : > { %2684 = vrcp.f32 %v1643_v37  ;;  %v1642_v44 = vadd.f32 1.0, %v2675_v40  ;;  %v2677_v45 = vpop.eup %2676  ;;  %s3843_s24 = sld [smem:[#allocation42_spill]]  ;;  %s2877_s16 = scalar_lea.vmem %s3669_s11, 512 }
 0x1c7   : > { %2686 = vrcp.f32 %v1604_v41  ;;  %v2679_v46 = vpop.eup %2678  ;;  %1653 = vst.msk [vmem:[%s3651_s17 + $0x8] sm:$0xff] %vm1038_vm6, %v2677_v45  ;;  %p2878_p9 = scmp.ne.s32.totalorder %s3669_s11, %s2877_s16  ;;  %s3021_s14 = smov [#allocation16]  }
 0x1c8   : > { %2688 = vrcp.f32 %v1642_v44  ;;  %1614 = vst.msk [vmem:[%s3615_s27] sm:$0xff] %vm1038_vm6, %v2679_v46  ;;  %s2881_s23 = sshll.u32 %s3021_s14, 4  ;;  %s2882_s23 = int_to_ptr.vmem [resolvable:$false] %s2881_s23 }
 0x1c9   : > { %p2879_p3 = pnand %p2878_p9, %p3218_p12  ;;  %s2883_s2 = scalar_lea.vmem %s2882_s23, 1024 }
 0x1ca   : > { %p2884_p5 = scmp.lt.s32.totalorder %s3669_s11, %s2882_s23  ;;  %p2885_p6 = scmp.lt.s32.totalorder %s2883_s2, %s2877_s16 }
 0x1cb   : > { %s3663_s30 = scalar_lea.hbm %s3842_s0, %s3445_s10  ;;  %p2880_p1 = pneg %p2879_p3 }
 0x1cc   : > { %s3844_s20 = smov %s3843_s24  ;;  %s3677_s21 = scalar_lea.hbm %s3843_s24, %s3445_s10 }
 0x1cd   : > { %v2681_v48 = vpop.eup %2680  ;;  %p2886_p8 = por %p2885_p6, %p2884_p5 }
 0x1ce   : > { %1652 = vst.msk [vmem:[%s3651_s17] sm:$0xff] %vm1038_vm6, %v2681_v48 }
 0x1cf   : > { %v2683_v49 = vpop.eup %2682  ;;  %p2887_p13 = pnand %p2886_p8, %p2880_p1 }
 0x1d0   : > { %v2685_v50 = vpop.eup %2684  ;;  %1617 = vst.msk [vmem:[%s3615_s27 + $0x18] sm:$0xff] %vm1038_vm6, %v2683_v49 }
 0x1d1   : > { %v2687_v51 = vpop.eup %2686  ;;  %1655 = vst.msk [vmem:[%s3651_s17 + $0x18] sm:$0xff] %vm1038_vm6, %v2685_v50 }
 0x1d2   : > { %v2689_v52 = vpop.eup %2688  ;;  %1616 = vst.msk [vmem:[%s3615_s27 + $0x10] sm:$0xff] %vm1038_vm6, %v2687_v51 }
 0x1d3   : > { %2890 = shalt.err (!%p2887_p13)
}
 0x1d4   : > { %s2891_s10 = scalar_lea.hbm %s3663_s30, 512  ;;  %s2895_s26 = scalar_lea.hbm %s3842_s0, 1024 }
 0x1d5   : > { %p2892_p2 = scmp.ne.s32.totalorder %s3663_s30, %s2891_s10  ;;  %p2896_p7 = scmp.lt.u32.totalorder %s3663_s30, %s3842_s0 }
 0x1d6   : > { %p2897_p10 = scmp.lt.u32.totalorder %s2895_s26, %s2891_s10  ;;  %p2899_p9 = scmp.lt.u32.totalorder %s2891_s10, %s3663_s30 }
 0x1d7   : > { %p2893_p4 = pnand %p2892_p2, %p3218_p12 }
 0x1d8   : > { %p2898_p0 = por %p2897_p10, %p2896_p7 }
 0x1d9   : > { %p2894_p11 = pneg %p2893_p4 }
 0x1da   : > { %p2900_p3 = por %p2899_p9, %p2898_p0 }
 0x1dc   : > { %p2901_p1 = pnand %p2900_p3, %p2894_p11 }
 0x1de   : > { %2904 = shalt.err (!%p2901_p1)
}
 0x1df   : > { %s3845_s2 = smov 8   ;;  %1654 = vst.msk [vmem:[%s3651_s17 + $0x10] sm:$0xff] %vm1038_vm6, %v2689_v52  ;;  %s1682_s16 = scalar_lea.sflag [#allocation18], %s3276_s1 }
 0x1e0   : > { %2490 = dma.vmem_to_hbm [thread:$0]  (%p3218_p12), %s3669_s11, 512, %s3663_s30, %s3623_s9, %s3838_s28, %s3838_s28, %s3845_s2  }
 0x1e1   : > { %s2905_s14 = scalar_lea.vmem %s3679_s15, 512  ;;  %s3022_s10 = smov [#allocation17]  }
 0x1e2   : > { %p2906_p5 = scmp.ne.s32.totalorder %s3679_s15, %s2905_s14  ;;  %s2909_s27 = sshll.u32 %s3022_s10, 4  ;;  %s2910_s27 = int_to_ptr.vmem [resolvable:$false] %s2909_s27 }
 0x1e3   : > { %s2911_s25 = scalar_lea.vmem %s2910_s27, 1024  ;;  %p2912_p13 = scmp.lt.s32.totalorder %s3679_s15, %s2910_s27 }
 0x1e4   : > { %p2907_p6 = pnand %p2906_p5, %p3218_p12  ;;  %p2913_p2 = scmp.lt.s32.totalorder %s2911_s25, %s2905_s14 }
 0x1e6   : > { %p2908_p8 = pneg %p2907_p6  ;;  %p2914_p4 = por %p2913_p2, %p2912_p13 }
 0x1e8   : > { %p2915_p11 = pnand %p2914_p4, %p2908_p8 }
 0x1ea   : > { %2918 = shalt.err (!%p2915_p11)
}
 0x1eb   : > { %s2919_s9 = scalar_lea.hbm %s3677_s21, 512  ;;  %s2923_s30 = scalar_lea.hbm %s3844_s20, 1024 }
 0x1ec   : > { %p2920_p7 = scmp.ne.s32.totalorder %s3677_s21, %s2919_s9  ;;  %p2924_p9 = scmp.lt.u32.totalorder %s3677_s21, %s3844_s20 }
 0x1ed   : > { %p2925_p3 = scmp.lt.u32.totalorder %s2923_s30, %s2919_s9  ;;  %p2927_p5 = scmp.lt.u32.totalorder %s2919_s9, %s3677_s21 }
 0x1ee   : > { %p2921_p10 = pnand %p2920_p7, %p3218_p12 }
 0x1ef   : > { %p2926_p1 = por %p2925_p3, %p2924_p9 }
 0x1f0   : > { %p2922_p0 = pneg %p2921_p10 }
 0x1f1   : > { %p2928_p6 = por %p2927_p5, %p2926_p1 }
 0x1f3   : > { %p2929_p8 = pnand %p2928_p6, %p2922_p0 }
 0x1f5   : > { %2932 = shalt.err (!%p2929_p8)
}
 0x1f6   : > { %2491 = dma.vmem_to_hbm [thread:$0]  (%p3218_p12), %s3679_s15, 512, %s3677_s21, %s1682_s16, %s3838_s28, %s3838_s28, %s3845_s2  }
 0x1f7 PF: > { %s3846_s23 = sld [smem:[#allocation26_spill]]  ;;  %s3847_s14 = sld [smem:[#allocation30_spill]] }
 0x1f8   : > { %p3849_p2 = scmp.ge.s32.totalorder %s3007_s29, 2 }
 0x1fd   : > { %s1802_s10 = sand.u32 1, %s3846_s23   ;;  %p3848_p13 = scmp.ne.s32.totalorder %s3847_s14, 0 }
 0x1fe   : > { %s1803_s27 = scalar_lea.sflag [#allocation4], %s1802_s10 }
 0x1ff   : > { %p2513_p4 = pnand %p3849_p2, %p3848_p13 }
 0x201   : > { %2970 = dma.done.wait (!%p2513_p4), %s1803_s27, 512  }
 0x202   : > { %2972 = vsyncadd (!%p2513_p4), %s1803_s27, 4294966784  ;;  %s3850_s19 = sadd.s32 4294967294, %s3007_s29  }
 0x203   : > { %s1811_s25 = sand.u32 1, %s3850_s19  }
 0x204   : > { %s1812_s9 = scalar_lea.sflag [#allocation12], %s1811_s25 }
 0x205   : > { %2974 = dma.done.wait (!%p2513_p4), %s1812_s9, 1024  }
 0x206   : > { %2976 = vsyncadd (!%p2513_p4), %s1812_s9, 4294966272  ;;  %s1830_s1 = scalar_lea.sflag [#allocation15], %s1811_s25 }
 0x207   : > { %2978 = dma.done.wait (!%p2513_p4), %s1830_s1, 1024  }
 0x208   : > { %2980 = vsyncadd (!%p2513_p4), %s1830_s1, 4294966272  ;;  %s1848_s28 = scalar_lea.sflag [#allocation18], %s1802_s10 }
 0x209   : > { %2982 = dma.done.wait (!%p2513_p4), %s1848_s28, 512  }
 0x20a   : > { %2984 = vsyncadd (!%p2513_p4), %s1848_s28, 4294966784  ;;  %s45_s29 = sadd.s32 1, %s3007_s29   ;;  %s3851_s24 = sld [smem:[#allocation27_spill]] }
 0x20b   : > { %p42_p12 = scmp.ge.s32.totalorder %s45_s29, 4   ;;  %s3852_s25 = sld [smem:[#allocation28_spill]] }
 0x20c   : > { %s3853_s26 = sld [smem:[#allocation32_spill]]  ;;  %s3854_s27 = sld [smem:[#allocation29_spill]] }
 0x20d   : > { %s3855_s28 = sld [smem:[#allocation31_spill]]  ;;  %44 = sbr.rel (!%p42_p12) target bundleno = 25 (0x19), region = 238 }
 0x214   :  { %1853 = vsyncpa [#allocation3], 1 }
 0x215   :  { %1855 = vsyncpa [#allocation3 + $0x1], 1 }
 0x216   :  { %1856 = vsyncpa [#allocation4], 1 }
 0x217   :  { %1858 = vsyncpa [#allocation4 + $0x1], 1 }
 0x218   :  { %1859 = vsyncpa [#allocation12], 1 }
 0x219   :  { %1861 = vsyncpa [#allocation12 + $0x1], 1 }
 0x21a   :  { %1862 = vsyncpa [#allocation15], 1 }
 0x21b   :  { %1864 = vsyncpa [#allocation15 + $0x1], 1 }
 0x21c   :  { %1865 = vsyncpa [#allocation18], 1 }
 0x21d   :  { %1867 = vsyncpa [#allocation18 + $0x1], 1 }
 0x21e   :  { %1868 = vsyncpa [#allocation5], 1 }
 0x21f   :  { %1870 = vsyncpa [#allocation5 + $0x1], 1 }
 0x220   :  { %1871 = vsyncpa [#allocation8], 1 }

</bundles_post_ra>
